<compile_context>
chip_gen: v7x
topology: tpu7x:2x2x1
jax: 0.10.0
libtpu: 0.0.40
codegen_flags: <defaults>
</compile_context>

<pallas_src>
import jax
import jax.numpy as jnp
from jax.experimental import pallas as pl
from jax.experimental.pallas import tpu as pltpu

EPS = 1e-5


def _bn_relu(h, gamma, beta):
    """BatchNorm1d (training mode, biased variance) + ReLU, f32 vreg math.

    h: (B, bn) f32 tile; gamma/beta: (1, bn) f32 slices.
    Two-pass form (mean, then mean of squared deviation) for stability.
    """
    m = jnp.mean(h, axis=0, keepdims=True)
    c = h - m
    var = jnp.mean(c * c, axis=0, keepdims=True)
    var = jnp.maximum(var, 0.0)                       # guard against tiny negatives
    scale = gamma * jax.lax.rsqrt(var + EPS)          # rsqrt -> EUP slot (free-ish)
    return jnp.maximum(c * scale + beta, 0.0)


def _vmem_cap_bytes():
    """~85% of physical VMEM (headroom for compiler-internal scratch)."""
    phys = 0
    try:
        phys = int(getattr(pltpu.get_tpu_info(), "vmem_capacity_bytes", 0))
    except Exception:
        phys = 0
    if phys <= 0:
        phys = 64 * 1024 * 1024          # conservative fallback = v7x per-TC VMEM
    return int(phys * 0.85)


def projector(x, w1, g1, b1, w2, g2, b2, w3, *, bn=256):
    """Fused Projector forward.

    x: (B, D_in) bf16 (pre-cast by the caller).
    w1/w2/w3: [in, out] bf16 (PyTorch weight.T, pre-cast by the caller).
    g1/b1/g2/b2: (1, H) f32 BatchNorm affine params.
    """
    B, D_in = x.shape
    H = w1.shape[1]
    D_out = w3.shape[1]
    assert w1.shape == (D_in, H)
    assert w2.shape == (H, H)
    assert w3.shape == (H, D_out)
    assert g1.shape == b1.shape == g2.shape == b2.shape == (1, H)

    if B % 8 != 0:
        raise ValueError("batch must be a multiple of 8 (sublane)")
    if H % bn != 0 or D_out % bn != 0:
        raise ValueError(f"hidden={H} and out_dim={D_out} must be divisible by bn={bn}")
    if bn % 128 != 0:
        raise ValueError("bn must be a multiple of 128 (lane)")

    # Defensive one-time casts (no-ops if caller already passed bf16).
    if x.dtype != jnp.bfloat16:
        x = x.astype(jnp.bfloat16)
    w1, w2, w3 = (w if w.dtype == jnp.bfloat16 else w.astype(jnp.bfloat16)
                  for w in (w1, w2, w3))

    # ---- grid: one step per output N-tile, phases concatenated -------------
    N1T, N2T, N3T = H // bn, H // bn, D_out // bn
    P2 = N1T                 # first step of layer 2
    P3 = N1T + N2T           # first step of layer 3
    total_steps = N1T + N2T + N3T

    # ---- index maps ---------------------------------------------------------
    # Pinned-resident arrays (x, gamma, beta) never change block index -> one DMA.
    def pinned(s):
        return (0, 0)

    # Weight tiles stream only during their own phase; outside it the index is
    # CLAMPED (not reset) so no redundant DMA occurs at phase boundaries, and
    # the first block of the next layer is prefetched during the current one.
    def w1_map(s):
        return (0, jnp.minimum(s, N1T - 1))

    def w2_map(s):
        return (0, jnp.minimum(jnp.maximum(s - P2, 0), N2T - 1))

    def w3_map(s):
        return (0, jnp.minimum(jnp.maximum(s - P3, 0), N3T - 1))

    out_map = w3_map

    # ---- kernel -------------------------------------------------------------
    def kernel(x_ref, w1_ref, g1_ref, b1_ref, w2_ref, g2_ref, b2_ref, w3_ref,
               o_ref, h1_ref, h2_ref):
        s = pl.program_id(0)

        # Phase 1: h1[:, n-tile] = relu(bn(x @ W1[:, n-tile]))  (full K in one dot)
        @pl.when(s < P2)
        def _layer1():
            h = jnp.dot(x_ref[...], w1_ref[...],
                        preferred_element_type=jnp.float32)
            col = pl.multiple_of(s * bn, bn)
            h = _bn_relu(h, g1_ref[:, pl.ds(col, bn)], b1_ref[:, pl.ds(col, bn)])
            h1_ref[:, pl.ds(col, bn)] = h.astype(h1_ref.dtype)

        # Phase 2: h2[:, n-tile] = relu(bn(h1 @ W2[:, n-tile]))
        @pl.when(jnp.logical_and(s >= P2, s < P3))
        def _layer2():
            h = jnp.dot(h1_ref[...], w2_ref[...],
                        preferred_element_type=jnp.float32)
            col = pl.multiple_of((s - P2) * bn, bn)
            h = _bn_relu(h, g2_ref[:, pl.ds(col, bn)], b2_ref[:, pl.ds(col, bn)])
            h2_ref[:, pl.ds(col, bn)] = h.astype(h2_ref.dtype)

        # Phase 3: out[:, n-tile] = h2 @ W3[:, n-tile]
        @pl.when(s >= P3)
        def _layer3():
            o_ref[...] = jnp.dot(h2_ref[...], w3_ref[...],
                                 preferred_element_type=jnp.float32
                                 ).astype(o_ref.dtype)

    # ---- VMEM budget: blocks (x2 buffers) + persistent scratch (x1) ---------
    BF16, F32 = 2, 4
    block_bytes = 2 * (B * D_in * BF16          # x (resident)
                       + D_in * bn * BF16       # W1 tile
                       + 2 * H * bn * BF16      # W2, W3 tiles
                       + 4 * H * F32            # gamma/beta strips (resident)
                       + B * bn * F32)          # output tile
    scratch_bytes = 2 * B * H * BF16            # h1 + h2 (NOT double-buffered)
    need = block_bytes + scratch_bytes + (4 << 20)   # + compiler headroom
    vmem_limit = max(min(need, _vmem_cap_bytes()), 16 << 20)

    return pl.pallas_call(
        kernel,
        out_shape=jax.ShapeDtypeStruct((B, D_out), jnp.float32),
        grid_spec=pltpu.PrefetchScalarGridSpec(
            num_scalar_prefetch=0,
            grid=(total_steps,),
            in_specs=[
                pl.BlockSpec((B, D_in), pinned),   # x   (fully resident)
                pl.BlockSpec((D_in, bn), w1_map),  # W1  (streams in phase 1)
                pl.BlockSpec((1, H), pinned),      # g1  (fully resident)
                pl.BlockSpec((1, H), pinned),      # b1
                pl.BlockSpec((H, bn), w2_map),     # W2  (streams in phase 2)
                pl.BlockSpec((1, H), pinned),      # g2
                pl.BlockSpec((1, H), pinned),      # b2
                pl.BlockSpec((H, bn), w3_map),     # W3  (streams in phase 3)
            ],
            out_specs=pl.BlockSpec((B, bn), out_map),
            scratch_shapes=[
                pltpu.VMEM((B, H), jnp.bfloat16),  # h1 (persistent, fused)
                pltpu.VMEM((B, H), jnp.bfloat16),  # h2 (persistent, fused)
            ],
        ),
        compiler_params=pltpu.CompilerParams(
            # Cross-phase dependence through h1/h2 scratch -> serial grid.
            dimension_semantics=("arbitrary",),
            vmem_limit_bytes=int(vmem_limit),
        ),
    )(x, w1, g1, b1, w2, g2, b2, w3)


def projector_ref(x, w1, g1, b1, w2, g2, b2, w3):
    """Pure-JAX reference with the same precision policy as the kernel
    (bf16 matmul inputs, f32 accumulation, f32 BN, bf16 intermediates)."""
    def bn_relu(h, g, b):
        m = jnp.mean(h, axis=0, keepdims=True)
        v = jnp.mean((h - m) ** 2, axis=0, keepdims=True)
        return jnp.maximum((h - m) * jax.lax.rsqrt(v + EPS) * g + b, 0.0)

    xb = x.astype(jnp.bfloat16)
    h = jnp.dot(xb, w1.astype(jnp.bfloat16), preferred_element_type=jnp.float32)
    h = bn_relu(h, g1, b1).astype(jnp.bfloat16)
    h = jnp.dot(h, w2.astype(jnp.bfloat16), preferred_element_type=jnp.float32)
    h = bn_relu(h, g2, b2).astype(jnp.bfloat16)
    return jnp.dot(h, w3.astype(jnp.bfloat16), preferred_element_type=jnp.float32)


if __name__ == "__main__":
    # Small but TPU-friendly shapes: batch multiple of 8, lane-dense feature
    # dims, consistent with Projector(in_dim, hidden_dim, out_dim).
    B, in_dim, hidden_dim, out_dim = 128, 256, 512, 256

    key = jax.random.PRNGKey(0)
    kx, k1, k2, k3, kg1, kb1, kg2, kb2 = jax.random.split(key, 8)

    x = jax.random.normal(kx, (B, in_dim), dtype=jnp.float32)

    # Linear weights stored as [in, out] (= PyTorch weight.T), no bias.
    w1 = jax.random.normal(k1, (in_dim, hidden_dim), dtype=jnp.float32) * 0.05
    w2 = jax.random.normal(k2, (hidden_dim, hidden_dim), dtype=jnp.float32) * 0.05
    w3 = jax.random.normal(k3, (hidden_dim, out_dim), dtype=jnp.float32) * 0.05

    # BatchNorm affine params, kept 2D [1, H] for TPU-friendly layout.
    g1 = 1.0 + 0.1 * jax.random.normal(kg1, (1, hidden_dim), dtype=jnp.float32)
    b1 = 0.1 * jax.random.normal(kb1, (1, hidden_dim), dtype=jnp.float32)
    g2 = 1.0 + 0.1 * jax.random.normal(kg2, (1, hidden_dim), dtype=jnp.float32)
    b2 = 0.1 * jax.random.normal(kb2, (1, hidden_dim), dtype=jnp.float32)

    # One-time bf16 casts OUTSIDE the kernel call path (in training these
    # would simply be carried in bf16) -- keeps the extra HBM pass off the hot path.
    xb = x.astype(jnp.bfloat16)
    w1b, w2b, w3b = (w.astype(jnp.bfloat16) for w in (w1, w2, w3))

    out = jax.block_until_ready(
        projector(xb, w1b, g1, b1, w2b, g2, b2, w3b, bn=256))
    ref = jax.block_until_ready(projector_ref(x, w1, g1, b1, w2, g2, b2, w3))

    assert out.shape == (B, out_dim)
    max_err = float(jnp.max(jnp.abs(out - ref)))
    assert jnp.allclose(out, ref, atol=1e-2, rtol=1e-2), \
        f"mismatch vs reference (max abs err {max_err})"

    print("KERNEL_OK")
</pallas_src>

<mosaic_0001>
module attributes {stable_mosaic.version = 11 : i64} {
  func.func @kernel(%arg0: i32, %arg1: memref<128x256xbf16, #tpu.memory_space<vmem>>, %arg2: memref<256x256xbf16, #tpu.memory_space<vmem>>, %arg3: memref<1x512xf32, #tpu.memory_space<vmem>>, %arg4: memref<1x512xf32, #tpu.memory_space<vmem>>, %arg5: memref<512x256xbf16, #tpu.memory_space<vmem>>, %arg6: memref<1x512xf32, #tpu.memory_space<vmem>>, %arg7: memref<1x512xf32, #tpu.memory_space<vmem>>, %arg8: memref<512x256xbf16, #tpu.memory_space<vmem>>, %arg9: memref<128x256xf32, #tpu.memory_space<vmem>>, %arg10: memref<128x512xbf16, #tpu.memory_space<vmem>>, %arg11: memref<128x512xbf16, #tpu.memory_space<vmem>>) attributes {dimension_semantics = [#tpu.dimension_semantics<arbitrary>], iteration_bounds = array<i64: 5>, scalar_prefetch = 0 : i64, scratch_operands = 2 : i64, tpu.core_type = #tpu.core_type<tc>, window_params = [{pipeline_mode = #tpu.pipeline_mode<synchronous>, transform_indices = @transform_0, window_bounds = array<i64: 128, 256>}, {transform_indices = @transform_1, window_bounds = array<i64: 256, 256>}, {pipeline_mode = #tpu.pipeline_mode<synchronous>, transform_indices = @transform_2, window_bounds = array<i64: 1, 512>}, {pipeline_mode = #tpu.pipeline_mode<synchronous>, transform_indices = @transform_3, window_bounds = array<i64: 1, 512>}, {transform_indices = @transform_4, window_bounds = array<i64: 512, 256>}, {pipeline_mode = #tpu.pipeline_mode<synchronous>, transform_indices = @transform_5, window_bounds = array<i64: 1, 512>}, {pipeline_mode = #tpu.pipeline_mode<synchronous>, transform_indices = @transform_6, window_bounds = array<i64: 1, 512>}, {transform_indices = @transform_7, window_bounds = array<i64: 512, 256>}, {transform_indices = @transform_8, window_bounds = array<i64: 128, 256>}]} {
    %c2_i32 = arith.constant 2 : i32
    %0 = arith.cmpi slt, %arg0, %c2_i32 : i32
    %1 = arith.extui %0 : i1 to i32
    %c0_i32 = arith.constant 0 : i32
    %2 = arith.cmpi ne, %1, %c0_i32 : i32
    scf.if %2 {
      %c0 = arith.constant 0 : index
      %c0_4 = arith.constant 0 : index
      %11 = vector.load %arg1[%c0, %c0_4] : memref<128x256xbf16, #tpu.memory_space<vmem>>, vector<128x256xbf16>
      %c0_5 = arith.constant 0 : index
      %c0_6 = arith.constant 0 : index
      %12 = vector.load %arg2[%c0_5, %c0_6] : memref<256x256xbf16, #tpu.memory_space<vmem>>, vector<256x256xbf16>
      %cst = arith.constant dense<0.000000e+00> : vector<128x256xf32>
      %13 = tpu.matmul %11, %12, %cst {dimension_numbers = #tpu.dot_dimension_numbers<[1], [0], [0], [1], [0, 0, 1, 1], [], []>} : vector<128x256xbf16>, vector<256x256xbf16>, vector<128x256xf32> -> vector<128x256xf32>
      %c256_i32 = arith.constant 256 : i32
      %14 = arith.muli %arg0, %c256_i32 : i32
      %15 = tpu.assume_multiple %14, 256 : i32
      %c0_7 = arith.constant 0 : index
      %16 = arith.index_cast %15 : i32 to index
      %17 = vector.load %arg3[%c0_7, %16] : memref<1x512xf32, #tpu.memory_space<vmem>>, vector<1x256xf32>
      %c0_8 = arith.constant 0 : index
      %18 = arith.index_cast %15 : i32 to index
      %19 = vector.load %arg4[%c0_8, %18] : memref<1x512xf32, #tpu.memory_space<vmem>>, vector<1x256xf32>
      %cst_9 = arith.constant dense<0.000000e+00> : vector<256xf32>
      %20 = vector.multi_reduction <add>, %13, %cst_9 [0] : vector<128x256xf32> to vector<256xf32>
      %21 = vector.shape_cast %20 : vector<256xf32> to vector<1x256xf32>
      %cst_10 = arith.constant 1.280000e+02 : f32
      %22 = vector.broadcast %cst_10 : f32 to vector<1x256xf32>
      %23 = arith.divf %21, %22 : vector<1x256xf32>
      %24 = vector.broadcast %23 : vector<1x256xf32> to vector<128x256xf32>
      %25 = arith.subf %13, %24 : vector<128x256xf32>
      %26 = arith.mulf %25, %25 : vector<128x256xf32>
      %cst_11 = arith.constant dense<0.000000e+00> : vector<256xf32>
      %27 = vector.multi_reduction <add>, %26, %cst_11 [0] : vector<128x256xf32> to vector<256xf32>
      %28 = vector.shape_cast %27 : vector<256xf32> to vector<1x256xf32>
      %cst_12 = arith.constant 1.280000e+02 : f32
      %29 = vector.broadcast %cst_12 : f32 to vector<1x256xf32>
      %30 = arith.divf %28, %29 : vector<1x256xf32>
      %cst_13 = arith.constant 0.000000e+00 : f32
      %31 = vector.broadcast %cst_13 : f32 to vector<1x256xf32>
      %32 = arith.maximumf %30, %31 : vector<1x256xf32>
      %cst_14 = arith.constant 9.99999974E-6 : f32
      %33 = vector.broadcast %cst_14 : f32 to vector<1x256xf32>
      %34 = arith.addf %32, %33 : vector<1x256xf32>
      %35 = math.rsqrt %34 : vector<1x256xf32>
      %36 = arith.mulf %17, %35 : vector<1x256xf32>
      %37 = vector.broadcast %36 : vector<1x256xf32> to vector<128x256xf32>
      %38 = arith.mulf %25, %37 : vector<128x256xf32>
      %39 = vector.broadcast %19 : vector<1x256xf32> to vector<128x256xf32>
      %40 = arith.addf %38, %39 : vector<128x256xf32>
      %cst_15 = arith.constant 0.000000e+00 : f32
      %41 = vector.broadcast %cst_15 : f32 to vector<128x256xf32>
      %42 = arith.maximumf %40, %41 : vector<128x256xf32>
      %43 = arith.truncf %42 : vector<128x256xf32> to vector<128x256xbf16>
      %c0_16 = arith.constant 0 : index
      %44 = arith.index_cast %15 : i32 to index
      %45 = vector.load %arg10[%c0_16, %44] : memref<128x512xbf16, #tpu.memory_space<vmem>>, vector<128x256xbf16>
      tpu.vector_store %arg10[%c0_16, %44], %43 {strides = array<i32>} : memref<128x512xbf16, #tpu.memory_space<vmem>>, vector<128x256xbf16>,
    } else {
    }
    %c2_i32_0 = arith.constant 2 : i32
    %3 = arith.cmpi sge, %arg0, %c2_i32_0 : i32
    %c4_i32 = arith.constant 4 : i32
    %4 = arith.cmpi slt, %arg0, %c4_i32 : i32
    %5 = arith.andi %3, %4 : i1
    %6 = arith.extui %5 : i1 to i32
    %c0_i32_1 = arith.constant 0 : i32
    %7 = arith.cmpi ne, %6, %c0_i32_1 : i32
    scf.if %7 {
      %c0 = arith.constant 0 : index
      %c0_4 = arith.constant 0 : index
      %11 = vector.load %arg10[%c0, %c0_4] : memref<128x512xbf16, #tpu.memory_space<vmem>>, vector<128x512xbf16>
      %c0_5 = arith.constant 0 : index
      %c0_6 = arith.constant 0 : index
      %12 = vector.load %arg5[%c0_5, %c0_6] : memref<512x256xbf16, #tpu.memory_space<vmem>>, vector<512x256xbf16>
      %cst = arith.constant dense<0.000000e+00> : vector<128x256xf32>
      %13 = tpu.matmul %11, %12, %cst {dimension_numbers = #tpu.dot_dimension_numbers<[1], [0], [0], [1], [0, 0, 1, 1], [], []>} : vector<128x512xbf16>, vector<512x256xbf16>, vector<128x256xf32> -> vector<128x256xf32>
      %c2_i32_7 = arith.constant 2 : i32
      %14 = arith.subi %arg0, %c2_i32_7 : i32
      %c256_i32 = arith.constant 256 : i32
      %15 = arith.muli %14, %c256_i32 : i32
      %16 = tpu.assume_multiple %15, 256 : i32
      %c0_8 = arith.constant 0 : index
      %17 = arith.index_cast %16 : i32 to index
      %18 = vector.load %arg6[%c0_8, %17] : memref<1x512xf32, #tpu.memory_space<vmem>>, vector<1x256xf32>
      %c0_9 = arith.constant 0 : index
      %19 = arith.index_cast %16 : i32 to index
      %20 = vector.load %arg7[%c0_9, %19] : memref<1x512xf32, #tpu.memory_space<vmem>>, vector<1x256xf32>
      %cst_10 = arith.constant dense<0.000000e+00> : vector<256xf32>
      %21 = vector.multi_reduction <add>, %13, %cst_10 [0] : vector<128x256xf32> to vector<256xf32>
      %22 = vector.shape_cast %21 : vector<256xf32> to vector<1x256xf32>
      %cst_11 = arith.constant 1.280000e+02 : f32
      %23 = vector.broadcast %cst_11 : f32 to vector<1x256xf32>
      %24 = arith.divf %22, %23 : vector<1x256xf32>
      %25 = vector.broadcast %24 : vector<1x256xf32> to vector<128x256xf32>
      %26 = arith.subf %13, %25 : vector<128x256xf32>
      %27 = arith.mulf %26, %26 : vector<128x256xf32>
      %cst_12 = arith.constant dense<0.000000e+00> : vector<256xf32>
      %28 = vector.multi_reduction <add>, %27, %cst_12 [0] : vector<128x256xf32> to vector<256xf32>
      %29 = vector.shape_cast %28 : vector<256xf32> to vector<1x256xf32>
      %cst_13 = arith.constant 1.280000e+02 : f32
      %30 = vector.broadcast %cst_13 : f32 to vector<1x256xf32>
      %31 = arith.divf %29, %30 : vector<1x256xf32>
      %cst_14 = arith.constant 0.000000e+00 : f32
      %32 = vector.broadcast %cst_14 : f32 to vector<1x256xf32>
      %33 = arith.maximumf %31, %32 : vector<1x256xf32>
      %cst_15 = arith.constant 9.99999974E-6 : f32
      %34 = vector.broadcast %cst_15 : f32 to vector<1x256xf32>
      %35 = arith.addf %33, %34 : vector<1x256xf32>
      %36 = math.rsqrt %35 : vector<1x256xf32>
      %37 = arith.mulf %18, %36 : vector<1x256xf32>
      %38 = vector.broadcast %37 : vector<1x256xf32> to vector<128x256xf32>
      %39 = arith.mulf %26, %38 : vector<128x256xf32>
      %40 = vector.broadcast %20 : vector<1x256xf32> to vector<128x256xf32>
      %41 = arith.addf %39, %40 : vector<128x256xf32>
      %cst_16 = arith.constant 0.000000e+00 : f32
      %42 = vector.broadcast %cst_16 : f32 to vector<128x256xf32>
      %43 = arith.maximumf %41, %42 : vector<128x256xf32>
      %44 = arith.truncf %43 : vector<128x256xf32> to vector<128x256xbf16>
      %c0_17 = arith.constant 0 : index
      %45 = arith.index_cast %16 : i32 to index
      %46 = vector.load %arg11[%c0_17, %45] : memref<128x512xbf16, #tpu.memory_space<vmem>>, vector<128x256xbf16>
      tpu.vector_store %arg11[%c0_17, %45], %44 {strides = array<i32>} : memref<128x512xbf16, #tpu.memory_space<vmem>>, vector<128x256xbf16>,
    } else {
    }
    %c4_i32_2 = arith.constant 4 : i32
    %8 = arith.cmpi sge, %arg0, %c4_i32_2 : i32
    %9 = arith.extui %8 : i1 to i32
    %c0_i32_3 = arith.constant 0 : i32
    %10 = arith.cmpi ne, %9, %c0_i32_3 : i32
    scf.if %10 {
      %c0 = arith.constant 0 : index
      %c0_4 = arith.constant 0 : index
      %11 = vector.load %arg11[%c0, %c0_4] : memref<128x512xbf16, #tpu.memory_space<vmem>>, vector<128x512xbf16>
      %c0_5 = arith.constant 0 : index
      %c0_6 = arith.constant 0 : index
      %12 = vector.load %arg8[%c0_5, %c0_6] : memref<512x256xbf16, #tpu.memory_space<vmem>>, vector<512x256xbf16>
      %cst = arith.constant dense<0.000000e+00> : vector<128x256xf32>
      %13 = tpu.matmul %11, %12, %cst {dimension_numbers = #tpu.dot_dimension_numbers<[1], [0], [0], [1], [0, 0, 1, 1], [], []>} : vector<128x512xbf16>, vector<512x256xbf16>, vector<128x256xf32> -> vector<128x256xf32>
      %c0_7 = arith.constant 0 : index
      %c0_8 = arith.constant 0 : index
      %14 = vector.load %arg9[%c0_7, %c0_8] : memref<128x256xf32, #tpu.memory_space<vmem>>, vector<128x256xf32>
      tpu.vector_store %arg9[%c0_7, %c0_8], %13 {strides = array<i32>} : memref<128x256xf32, #tpu.memory_space<vmem>>, vector<128x256xf32>,
    } else {
    }
    return
  }
  func.func @transform_0(%arg0: i32) -> (i32, i32) {
    %c0_i32 = arith.constant 0 : i32
    %c0_i32_0 = arith.constant 0 : i32
    %c0_i32_1 = arith.constant 0 : i32
    return %c0_i32, %c0_i32_0 : i32, i32
  }
  func.func @transform_1(%arg0: i32) -> (i32, i32) {
    %c1_i32 = arith.constant 1 : i32
    %0 = arith.minsi %arg0, %c1_i32 : i32
    %c0_i32 = arith.constant 0 : i32
    %c0_i32_0 = arith.constant 0 : i32
    return %c0_i32, %0 : i32, i32
  }
  func.func @transform_2(%arg0: i32) -> (i32, i32) {
    %c0_i32 = arith.constant 0 : i32
    %c0_i32_0 = arith.constant 0 : i32
    %c0_i32_1 = arith.constant 0 : i32
    return %c0_i32, %c0_i32_0 : i32, i32
  }
  func.func @transform_3(%arg0: i32) -> (i32, i32) {
    %c0_i32 = arith.constant 0 : i32
    %c0_i32_0 = arith.constant 0 : i32
    %c0_i32_1 = arith.constant 0 : i32
    return %c0_i32, %c0_i32_0 : i32, i32
  }
  func.func @transform_4(%arg0: i32) -> (i32, i32) {
    %c2_i32 = arith.constant 2 : i32
    %0 = arith.subi %arg0, %c2_i32 : i32
    %c0_i32 = arith.constant 0 : i32
    %1 = arith.maxsi %0, %c0_i32 : i32
    %c1_i32 = arith.constant 1 : i32
    %2 = arith.minsi %1, %c1_i32 : i32
    %c0_i32_0 = arith.constant 0 : i32
    %c0_i32_1 = arith.constant 0 : i32
    return %c0_i32_0, %2 : i32, i32
  }
  func.func @transform_5(%arg0: i32) -> (i32, i32) {
    %c0_i32 = arith.constant 0 : i32
    %c0_i32_0 = arith.constant 0 : i32
    %c0_i32_1 = arith.constant 0 : i32
    return %c0_i32, %c0_i32_0 : i32, i32
  }
  func.func @transform_6(%arg0: i32) -> (i32, i32) {
    %c0_i32 = arith.constant 0 : i32
    %c0_i32_0 = arith.constant 0 : i32
    %c0_i32_1 = arith.constant 0 : i32
    return %c0_i32, %c0_i32_0 : i32, i32
  }
  func.func @transform_7(%arg0: i32) -> (i32, i32) {
    %c4_i32 = arith.constant 4 : i32
    %0 = arith.subi %arg0, %c4_i32 : i32
    %c0_i32 = arith.constant 0 : i32
    %1 = arith.maxsi %0, %c0_i32 : i32
    %c0_i32_0 = arith.constant 0 : i32
    %2 = arith.minsi %1, %c0_i32_0 : i32
    %c0_i32_1 = arith.constant 0 : i32
    %c0_i32_2 = arith.constant 0 : i32
    return %c0_i32_1, %2 : i32, i32
  }
  func.func @transform_8(%arg0: i32) -> (i32, i32) {
    %c4_i32 = arith.constant 4 : i32
    %0 = arith.subi %arg0, %c4_i32 : i32
    %c0_i32 = arith.constant 0 : i32
    %1 = arith.maxsi %0, %c0_i32 : i32
    %c0_i32_0 = arith.constant 0 : i32
    %2 = arith.minsi %1, %c0_i32_0 : i32
    %c0_i32_1 = arith.constant 0 : i32
    %c0_i32_2 = arith.constant 0 : i32
    return %c0_i32_1, %2 : i32, i32
  }
}

</mosaic_0001>

<bundles_post_ra>
// kernel: tpu_custom_call.1
= control target key start
LH: loop header
LB: loop body
LE: loop exit
PB: predicated region body
PF: predicated region fallthrough
CT: control target
= control target key end

     0   :  { %s5138_s0 = inlined_call_operand.hbm [shape: bf16[128,256], index: 0, kind: input, shape index: {}]   ;;  %s5139_s1 = inlined_call_operand.hbm [shape: bf16[256,512], index: 1, kind: input, shape index: {}]   ;;  %s5140_s2 = inlined_call_operand.vmem [shape: f32[1,512], index: 2, kind: input, shape index: {}]   ;;  %s5141_s3 = inlined_call_operand.vmem [shape: f32[1,512], index: 3, kind: input, shape index: {}]   ;;  %s5142_s4 = inlined_call_operand.hbm [shape: bf16[512,512], index: 4, kind: input, shape index: {}]   ;;  %s5143_s5 = inlined_call_operand.vmem [shape: f32[1,512], index: 5, kind: input, shape index: {}]   ;;  %s5144_s6 = inlined_call_operand.vmem [shape: f32[1,512], index: 6, kind: input, shape index: {}]   ;;  %s5145_s7 = inlined_call_operand.hbm [shape: bf16[512,256], index: 7, kind: input, shape index: {}]   ;;  %s5146_s8 = inlined_call_operand.hbm [shape: f32[128,256], index: 8, kind: output, shape index: {}]  }
   0x1   :  { %5163 = sst [smem:[#allocation21_spill]] %s5138_s0 }
   0x2   :  { %5164 = sst [smem:[#allocation22_spill]] %s5139_s1 }
   0x3   :  { %5165 = sst [smem:[#allocation23_spill]] %s5143_s5 }
   0x4   :  { %5166 = sst [smem:[#allocation24_spill]] %s5144_s6 }
   0x5   :  { %5167 = sst [smem:[#allocation25_spill]] %s5146_s8 }
   0x6   :  { %13 = vsyncpa [#allocation5], 0 }
   0x7   :  { %14 = vsyncpa [#allocation8], 0 }
   0x8   :  { %16 = vsyncpa [#allocation8 + $0x1], 0 }
   0x9   :  { %17 = vsyncpa [#allocation11], 0 }
   0xa   :  { %19 = vsyncpa [#allocation11 + $0x1], 0 }
   0xb   :  { %20 = vsyncpa [#allocation6], 0 }
   0xc   :  { %22 = vsyncpa [#allocation6 + $0x1], 0  ;;  %s4056_s27 = smov 0   ;;  %s4058_s28 = smov 0  }
   0xd   :  { %s4060_s29 = smov 0   ;;  %s4062_s30 = smov 0  }
   0xe   :  { %s4064_s9 = smov 0   ;;  %s4066_s10 = smov 0  }
   0xf   :  { %s4068_s11 = smov 0  }
  0x10 LB: > { %5168 = sst [smem:[#allocation18_spill]] %s3993_s10  ;;  %s4092_s12 = sadd.s32 1, %s3997_s11   ;;  %s3997_s11 = sphi %s4068_s11, %s5205_s11   ;;  %s3993_s10 = sphi %s4066_s10, %s5207_s10   ;;  %s3989_s9 = sphi %s4064_s9, %s5212_s9   ;;  %s3985_s30 = sphi %s4062_s30, %s5211_s30   ;;  %s3981_s29 = sphi %s4060_s29, %s5210_s29   ;;  %s3977_s28 = sphi %s4058_s28, %s5209_s28   ;;  %s3973_s27 = sphi %s4056_s27, %s5208_s27  }
  0x11   : > { %5169 = sst [smem:[#allocation19_spill]] %s4092_s12  ;;  %p53_p0 = scmp.lt.s32.totalorder %s3997_s11, 1 }
  0x12   : > { %p55_p1 = scmp.lt.s32.totalorder %s4092_s12, 1  ;;  %s60_s13 = sadd.s32 1, %s3993_s10 }
  0x13   : > { %s54_s14 = scalar_select %p53_p0, %s3997_s11, 1 }
  0x14   : > { %s56_s15 = scalar_select %p55_p1, %s4092_s12, 1 }
  0x15   : > { %p67_p2 = scmp.ne.s32.totalorder %s3993_s10, %s3989_s9  ;;  %p5153_p3 = scmp.eq.s32.totalorder %s3997_s11, 0 }
  0x16   : > { %s57_s16 = ssub.s32 %s54_s14, %s56_s15  ;;  %s4103_s17 = sadd.s32 4294967294, %s4092_s12 }
  0x17   : > { %p58_p4 = scmp.eq.s32.totalorder %s57_s16, 0  ;;  %p69_p5 = por %p5153_p3, %p67_p2 }
  0x18   : > { %p5147_p7 = scmp.lt.s32.totalorder %s3997_s11, 5  ;;  %s314_s19 = sand.u32 1, %s3997_s11  }
  0x19   : > { %s4109_s18 = scalar_select %p58_p4, %s3993_s10, %s60_s13  }
  0x1a   : > { %s316_s20 = sand.u32 1, %s3993_s10   ;;  %s3309_s22 = sshll.u32 %s54_s14, 7 }
  0x1b   : > { %5170 = sst [smem:[#allocation20_spill]] %s4109_s18  ;;  %s3084_s21 = sshll.u32 %s316_s20, 8 }
  0x1c   : > { %s5171_s1 = sld [smem:[#allocation22_spill]]  ;;  %s318_s26 = scalar_lea.vmem [#allocation7], %s3084_s21 }
  0x1d   : > { %s327_s15 = sshll.u32 %s318_s26, 4  ;;  %p4121_p8 = pnand %p5147_p7, %p69_p5  ;;  %s4125_s15 = int_to_ptr.vmem [resolvable:$true] %s327_s15 }
  0x1e   : > { %s4127_s14 = scalar_lea.sflag [#allocation8], %s314_s19 }
  0x1f   : > { %p3783_p10 = pneg %p4121_p8 }
  0x22   : > { %s4117_s25 = scalar_lea.hbm %s5171_s1, %s3309_s22  ;;  %s3786_s22 = scalar_lea.hbm %s5171_s1, 8192 }
  0x23   : > { %s3781_s16 = scalar_lea.hbm %s4117_s25, 4096  ;;  %p3787_p13 = scmp.lt.u32.totalorder %s4117_s25, %s5171_s1 }
  0x24   : > { %p3782_p9 = scmp.ne.s32.totalorder %s4117_s25, %s3781_s16  ;;  %p3788_p0 = scmp.lt.u32.totalorder %s3786_s22, %s3781_s16 }
  0x25   : > { %p3790_p2 = scmp.lt.u32.totalorder %s3781_s16, %s4117_s25 }
  0x26   : > { %p3784_p11 = pnand %p3783_p10, %p3782_p9  ;;  %p3789_p1 = por %p3788_p0, %p3787_p13 }
  0x28   : > { %p3785_p12 = pneg %p3784_p11  ;;  %p3791_p4 = por %p3790_p2, %p3789_p1 }
  0x2a   : > { %p3792_p5 = pnand %p3791_p4, %p3785_p12 }
  0x2c   : > { %3795 = shalt.err (!%p3792_p5)
}
  0x2d   : > { %s3796_s19 = scalar_lea.vmem %s4125_s15, 4096  ;;  %s3999_s26 = smov [#allocation7]  }
  0x2e   : > { %p3797_p9 = scmp.ne.s32.totalorder %s4125_s15, %s3796_s19  ;;  %s3801_s20 = sshll.u32 %s3999_s26, 4  ;;  %s3802_s20 = int_to_ptr.vmem [resolvable:$false] %s3801_s20 }
  0x2f   : > { %s3803_s21 = scalar_lea.vmem %s3802_s20, 8192  ;;  %p3804_p7 = scmp.lt.s32.totalorder %s4125_s15, %s3802_s20 }
  0x30   : > { %p3799_p11 = pnand %p3797_p9, %p3783_p10  ;;  %p3805_p13 = scmp.lt.s32.totalorder %s3803_s21, %s3796_s19 }
  0x32   : > { %p3800_p6 = pneg %p3799_p11  ;;  %p3806_p0 = por %p3805_p13, %p3804_p7 }
  0x34   : > { %p3807_p1 = pnand %p3806_p0, %p3800_p6 }
  0x36   : > { %3810 = shalt.err (!%p3807_p1)
}
  0x37   : > { %s5148_s16 = smov 256   ;;  %s5149_s22 = smov 128  }
  0x38   : > { %s5151_s23 = smov 8   ;;  %s4159_s24 = sadd.s32 4294967295, %s3997_s11  }
  0x39   : > { %3428 = dma.hbm_to_vmem [thread:$0]  (!%p4121_p8), %s4117_s25, 4096, %s4125_s15, %s4127_s14, %s5148_s16, %s5149_s22, %s5151_s23  }
  0x3a   : > { %p73_p6 = scmp.ne.s32.totalorder %s3989_s9, %s3985_s30  ;;  %p5155_p7 = scmp.eq.s32.totalorder %s4159_s24, 0 }
  0x3b   : > { %p145_p10 = scmp.ne.s32.totalorder %s3981_s29, %s3977_s28  ;;  %p151_p12 = scmp.ne.s32.totalorder %s3977_s28, %s3973_s27 }
  0x3c   : > { %p4170_p2 = por %p5155_p7, %p73_p6  ;;  %p3081_p9 = scmp.ge.s32.totalorder %s3997_s11, 1 }
  0x3d   : > { %p147_p8 = por %p145_p10, %p5153_p3  ;;  %p4179_p5 = por %p151_p12, %p5155_p7 }
  0x3e   : > { %s5173_s13 = scalar_select %p4170_p2, 1, 0 }
  0x3f   : > { %s5174_s25 = scalar_select %p4179_p5, 1, 0 }
  0x40   : > { %p276_p11 = scmp.lt.s32.totalorder %s3997_s11, 6  ;;  %s4003_s27 = smov [#allocation4]  }
  0x41   : > { %s288_s15 = sshll.u32 %s4003_s27, 4  ;;  %p5176_p0 = scmp.lt.s32.totalorder %s3997_s11, 5  ;;  %s4189_s15 = int_to_ptr.vmem [resolvable:$true] %s288_s15 }
  0x42   : > { %p4185_p13 = pnand %p3081_p9, %p276_p11  ;;  %s4200_s26 = sadd.s32 4294967294, %s3997_s11  }
  0x43   : > { %p4193_p1 = pnand %p5176_p0, %p147_p8  ;;  %p126_p10 = scmp.gt.s32.totalorder %s4200_s26, 0 }
  0x44   : > { %s5175_s30 = scalar_select %p4185_p13, 1, 0 }
  0x45   : > { %s5177_s19 = scalar_select %p4193_p1, 1, 0 }
  0x46   : > { %p3421_p6 = pneg %p4185_p13  ;;  %s5179_s0 = sld [smem:[#allocation21_spill]] }
  0x47   : > { %s127_s21 = scalar_select %p126_p10, %s4200_s26, 0 }
  0x48   : > { %p4205_p12 = pnand %p3421_p6, %p5155_p7 }
  0x4a   : > { %p3813_p0 = pneg %p4205_p12 }
  0x4c   : > { %s3811_s22 = scalar_lea.hbm %s5179_s0, 2048 }
  0x4d   : > { %p3812_p11 = scmp.ne.s32.totalorder %s5179_s0, %s3811_s22  ;;  %p3818_p6 = scmp.lt.u32.totalorder %s3811_s22, %s5179_s0 }
  0x4f   : > { %p3814_p4 = pnand %p3813_p0, %p3812_p11 }
  0x51   : > { %p3815_p3 = pneg %p3814_p4 }
  0x53   : > { %p3820_p7 = pnand %p3818_p6, %p3815_p3 }
  0x55   : > { %3823 = shalt.err (!%p3820_p7)
}
  0x56   : > { %s3824_s12 = scalar_lea.vmem %s4189_s15, 2048  ;;  %p3832_p5 = scmp.lt.s32.totalorder %s4189_s15, %s4189_s15 }
  0x57   : > { %p3825_p10 = scmp.ne.s32.totalorder %s4189_s15, %s3824_s12  ;;  %p3833_p2 = scmp.lt.s32.totalorder %s3824_s12, %s3824_s12 }
  0x59   : > { %p3827_p8 = pnand %p3825_p10, %p3813_p0  ;;  %p3834_p13 = por %p3833_p2, %p3832_p5 }
  0x5b   : > { %p3828_p9 = pneg %p3827_p8 }
  0x5d   : > { %p3835_p1 = pnand %p3834_p13, %p3828_p9 }
  0x5f   : > { %3838 = shalt.err (!%p3835_p1)
}
  0x60   : > { %s5180_s1 = smov 8   ;;  %s5181_s10 = smov 128  }
  0x61   : > { %3424 = dma.hbm_to_vmem [thread:$0]  (!%p4205_p12), %s5179_s0, 2048, %s4189_s15, [#allocation5], %s5181_s10, %s5181_s10, %s5180_s1  }
  0x62   : > { %p5182_p3 = scmp.lt.s32.totalorder %s4200_s26, 1  ;;  %p5183_p7 = scmp.gt.s32.totalorder %s4103_s17, 0 }
  0x63   : > { %s138_s22 = sadd.s32 1, %s3981_s29  ;;  %p5184_p4 = scmp.lt.s32.totalorder %s4103_s17, 1 }
  0x64   : > { %s5214_s21 = smov (!%p5182_p3, %s127_s21), 1  ;;  %s339_s23 = sand.u32 1, %s3981_s29  }
  0x65   : > { %s132_s12 = scalar_select %p5183_p7, %s4103_s17, 0 }
  0x66   : > { %s3312_s20 = sshll.u32 %s5214_s21, 7  ;;  %s3087_s18 = sshll.u32 %s339_s23, 9 }
  0x67   : > { %s5216_s12 = smov (!%p5184_p4, %s132_s12), 1  ;;  %s4249_s6 = scalar_lea.hbm %s5142_s4, %s3312_s20 }
  0x68   : > { %s135_s27 = ssub.s32 %s5214_s21, %s5216_s12  ;;  %s341_s15 = scalar_lea.vmem [#allocation9], %s3087_s18 }
  0x69   : > { %p136_p5 = scmp.eq.s32.totalorder %s135_s27, 0  ;;  %s353_s0 = sshll.u32 %s341_s15, 4  ;;  %s4254_s0 = int_to_ptr.vmem [resolvable:$true] %s353_s0 }
  0x6a   : > { %s3839_s17 = scalar_lea.hbm %s4249_s6, 8192  ;;  %p5185_p1 = scmp.ne.s32.totalorder %s5177_s19, 0 }
  0x6b   : > { %s4252_s5 = scalar_select %p136_p5, %s3981_s29, %s138_s22  }
  0x6c   : > { %p3840_p13 = scmp.ne.s32.totalorder %s4249_s6, %s3839_s17  ;;  %p3841_p12 = pneg %p5185_p1 }
  0x6d   : > { %s3844_s12 = scalar_lea.hbm %s5142_s4, 16384  ;;  %p3845_p11 = scmp.lt.u32.totalorder %s4249_s6, %s5142_s4 }
  0x6e   : > { %p3842_p9 = pnand %p3841_p12, %p3840_p13  ;;  %p3846_p0 = scmp.lt.u32.totalorder %s3844_s12, %s3839_s17 }
  0x6f   : > { %p3848_p10 = scmp.lt.u32.totalorder %s3839_s17, %s4249_s6 }
  0x70   : > { %p3843_p8 = pneg %p3842_p9  ;;  %p3847_p6 = por %p3846_p0, %p3845_p11 }
  0x72   : > { %p3849_p3 = por %p3848_p10, %p3847_p6 }
  0x74   : > { %p3850_p7 = pnand %p3849_p3, %p3843_p8 }
  0x76   : > { %3853 = shalt.err (!%p3850_p7)
}
  0x77   : > { %s3854_s22 = scalar_lea.vmem %s4254_s0, 8192  ;;  %s4004_s27 = smov [#allocation9]  }
  0x78   : > { %p3855_p4 = scmp.ne.s32.totalorder %s4254_s0, %s3854_s22  ;;  %s3859_s18 = sshll.u32 %s4004_s27, 4  ;;  %s3860_s18 = int_to_ptr.vmem [resolvable:$false] %s3859_s18 }
  0x79   : > { %s3861_s16 = scalar_lea.vmem %s3860_s18, 16384  ;;  %p3862_p9 = scmp.lt.s32.totalorder %s4254_s0, %s3860_s18 }
  0x7a   : > { %p3857_p5 = pnand %p3855_p4, %p3841_p12  ;;  %p3863_p11 = scmp.lt.s32.totalorder %s3861_s16, %s3854_s22 }
  0x7c   : > { %p3858_p13 = pneg %p3857_p5  ;;  %p3864_p0 = por %p3863_p11, %p3862_p9 }
  0x7e   : > { %p3865_p6 = pnand %p3864_p0, %p3858_p13 }
  0x80   : > { %3868 = shalt.err (!%p3865_p6)
}
  0x81   : > { %s5186_s15 = smov 256   ;;  %s4005_s17 = smov [#allocation10]  }
  0x82   : > { %3431 = dma.hbm_to_vmem [thread:$0]  (!%p5185_p1), %s4249_s6, 8192, %s4254_s0, %s4127_s14, %s5186_s15, %s5181_s10, %s5180_s1  }
  0x83   : > { %s379_s8 = sshll.u32 %s4005_s17, 4  ;;  %p5187_p12 = scmp.eq.s32.totalorder %s3997_s11, 0  ;;  %s380_s8 = int_to_ptr.vmem [resolvable:$true] %s379_s8 }
  0x84   : > { %p5188_p8 = scmp.lt.s32.totalorder %s3997_s11, 5  ;;  %s3869_s23 = scalar_lea.hbm %s5145_s7, 8192 }
  0x85   : > { %p3870_p3 = scmp.ne.s32.totalorder %s5145_s7, %s3869_s23  ;;  %p3876_p5 = scmp.lt.u32.totalorder %s3869_s23, %s5145_s7 }
  0x86   : > { %p4289_p10 = pnand %p5188_p8, %p5187_p12 }
  0x88   : > { %p3871_p1 = pneg %p4289_p10 }
  0x8a   : > { %p3872_p7 = pnand %p3871_p1, %p3870_p3 }
  0x8c   : > { %p3873_p4 = pneg %p3872_p7 }
  0x8e   : > { %p3878_p13 = pnand %p3876_p5, %p3873_p4 }
  0x90   : > { %3881 = shalt.err (!%p3878_p13)
}
  0x91   : > { %s3882_s14 = scalar_lea.vmem %s380_s8, 8192  ;;  %s3889_s27 = scalar_lea.vmem %s380_s8, 16384 }
  0x92   : > { %p3883_p9 = scmp.ne.s32.totalorder %s380_s8, %s3882_s14  ;;  %p3890_p6 = scmp.lt.s32.totalorder %s380_s8, %s380_s8 }
  0x93   : > { %p3891_p12 = scmp.lt.s32.totalorder %s3889_s27, %s3882_s14 }
  0x94   : > { %p3885_p11 = pnand %p3883_p9, %p3871_p1 }
  0x95   : > { %p3892_p8 = por %p3891_p12, %p3890_p6 }
  0x96   : > { %p3886_p0 = pneg %p3885_p11 }
  0x98   : > { %p3893_p2 = pnand %p3892_p8, %p3886_p0 }
  0x9a   : > { %3896 = shalt.err (!%p3893_p2)
}
  0x9b   : > { %3434 = dma.hbm_to_vmem [thread:$0]  (!%p4289_p10), %s5145_s7, 8192, %s380_s8, [#allocation11], %s5181_s10, %s5181_s10, %s5180_s1  }
  0x9c   : > { %p5190_p3 = scmp.ne.s32.totalorder %s5175_s30, 0 }
  0x9d   : > { %p5191_p1 = scmp.eq.s32.totalorder (!%p5190_p3), %s4159_s24, 0 }
  0x9e   : > { %391 = sbr.rel (%p5190_p3) target bundleno = 1476 (0x5c4), region = 52 }
  0xa5   : > { %3952 = dma.done.wait (%p5191_p1), [#allocation5], 2048   ;;  %p5192_p7 = pmov %p5191_p1 }
  0xa6   : > { %s397_s15 = sand.u32 1, %s4159_s24   ;;  %s399_s17 = sand.u32 1, %s3989_s9  }
  0xa7   : > { %3954 = vsyncadd (%p5192_p7), [#allocation5], 4294965248  ;;  %s3107_s21 = sshll.u32 %s399_s17, 8  ;;  %s398_s19 = scalar_lea.sflag [#allocation8], %s397_s15 }
  0xa8   : > { %s4320_s12 = scalar_lea.vmem [#allocation7], %s3107_s21  ;;  %p5193_p2 = scmp.ne.s32.totalorder %s5173_s13, 0 }
  0xaa   : > { %3956 = dma.done.wait (%p5193_p2), %s398_s19, 4096  }
  0xab   : > { %3958 = vsyncadd (%p5193_p2), %s398_s19, 4294963200  ;;  %s408_s30 = sand.u32 1, %s3977_s28   ;;  %p5194_p10 = scmp.ne.s32.totalorder %s5174_s25, 0 }
  0xac   : > { %s3108_s1 = sshll.u32 %s408_s30, 9 }
  0xad   : > { %s4327_s10 = scalar_lea.vmem [#allocation9], %s3108_s1 }
  0xae   : > { %3960 = dma.done.wait (%p5194_p10), %s398_s19, 8192  }
  0xaf   : > { %3962 = vsyncadd (%p5194_p10), %s398_s19, 4294959104  ;;  %p5195_p4 = pmov %p5191_p1 }
  0xb0   : > { %p5196_p5 = pmov %p5191_p1 }
  0xb1   : > { %3964 = dma.done.wait (%p5195_p4), [#allocation11], 8192  }
  0xb2   : > { %3966 = vsyncadd (%p5196_p5), [#allocation11], 4294959104  ;;  %p3111_p13 = scmp.ge.s32.totalorder %s4159_s24, 2 }
  0xb3   : > { %v3509_v0 = vld [vmem:[%s4320_s12 + $0x4] ss:$8 sps:$4 sm:$0xff] (!%p3111_p13)   ;;  %v3511_v1 = vld [vmem:[%s4320_s12] ss:$8 sps:$4 sm:$0xff] (!%p3111_p13)   ;;  %v3512_v2 = vld [vmem:[%s4320_s12 + $0x14] ss:$8 sps:$4 sm:$0xff] (!%p3111_p13)  }
  0xb4   : > { %486 = sbr.rel (%p3111_p13) target bundleno = 631 (0x277), region = 72  ;;  %775 = vmatprep.subr.bf16.mxu0 (!%p3111_p13), %v3509_v0  ;;  %3313 = vmatprep.subr.bf16.mxu1 (!%p3111_p13), %v3509_v0  ;;  %v3514_v3 = vld [vmem:[%s4320_s12 + $0x10] ss:$8 sps:$4 sm:$0xff] (!%p3111_p13)   ;;  %v3515_v4 = vld [vmem:[%s4320_s12 + $0x24] ss:$8 sps:$4 sm:$0xff] (!%p3111_p13)   ;;  %s3160_s13 = sshll.u32 (!%p3111_p13), %s4159_s24, 8 }
  0xb5   : > { %776 = vmatpush1.bf16.msra.mxu0 (!%p3111_p13), %v3511_v1  ;;  %3329 = vmatpush1.bf16.msra.mxu1 (!%p3111_p13), %v3511_v1  ;;  %v3517_v5 = vld [vmem:[%s4320_s12 + $0x20] ss:$8 sps:$4 sm:$0xff] (!%p3111_p13)   ;;  %v3518_v6 = vld [vmem:[%s4320_s12 + $0x34] ss:$8 sps:$4 sm:$0xff] (!%p3111_p13)   ;;  %v3520_v7 = vld [vmem:[%s4320_s12 + $0x30] ss:$8 sps:$4 sm:$0xff] (!%p3111_p13)  }
  0xb6   : > { %777 = vmatprep.subr.bf16.mxu0 (!%p3111_p13), %v3512_v2  ;;  %3314 = vmatprep.subr.bf16.mxu1 (!%p3111_p13), %v3512_v2  ;;  %v3521_v8 = vld [vmem:[%s4320_s12 + $0x44] ss:$8 sps:$4 sm:$0xff] (!%p3111_p13)   ;;  %v3523_v9 = vld [vmem:[%s4320_s12 + $0x40] ss:$8 sps:$4 sm:$0xff] (!%p3111_p13)   ;;  %v3524_v10 = vld [vmem:[%s4320_s12 + $0x54] ss:$8 sps:$4 sm:$0xff] (!%p3111_p13)  }
  0xb7   : > { %v3526_v11 = vld [vmem:[%s4320_s12 + $0x50] ss:$8 sps:$4 sm:$0xff] (!%p3111_p13)   ;;  %v3527_v12 = vld [vmem:[%s4320_s12 + $0x64] ss:$8 sps:$4 sm:$0xff] (!%p3111_p13)   ;;  %v3529_v14 = vld [vmem:[%s4320_s12 + $0x60] ss:$8 sps:$4 sm:$0xff] (!%p3111_p13)  }
  0xb8   : > { %v3559_v13 = vld [vmem:[#allocation4 + $0x4] ss:$8 sps:$4 sm:$0xff] (!%p3111_p13)   ;;  %v3530_v15 = vld [vmem:[%s4320_s12 + $0x74] ss:$8 sps:$4 sm:$0xff] (!%p3111_p13)   ;;  %v3532_v17 = vld [vmem:[%s4320_s12 + $0x70] ss:$8 sps:$4 sm:$0xff] (!%p3111_p13)  }
  0xb9   : > { %778 = vmatpush1.bf16.msra.mxu0 (!%p3111_p13), %v3514_v3  ;;  %3330 = vmatpush1.bf16.msra.mxu1 (!%p3111_p13), %v3514_v3  ;;  %v3565_v16 = vld [vmem:[#allocation4 + $0x44] ss:$8 sps:$4 sm:$0xff] (!%p3111_p13)   ;;  %v3535_v19 = vld [vmem:[%s4320_s12 + $0x80] ss:$8 sps:$4 sm:$0xff] (!%p3111_p13)   ;;  %v3536_v20 = vld [vmem:[%s4320_s12 + $0x94] ss:$8 sps:$4 sm:$0xff] (!%p3111_p13)  }
  0xba   : > { %779 = vmatprep.subr.bf16.mxu0 (!%p3111_p13), %v3515_v4  ;;  %3315 = vmatprep.subr.bf16.mxu1 (!%p3111_p13), %v3515_v4  ;;  %v3533_v18 = vld [vmem:[%s4320_s12 + $0x84] ss:$8 sps:$4 sm:$0xff] (!%p3111_p13)   ;;  %v3538_v21 = vld [vmem:[%s4320_s12 + $0x90] ss:$8 sps:$4 sm:$0xff] (!%p3111_p13)   ;;  %v3541_v23 = vld [vmem:[%s4320_s12 + $0xa0] ss:$8 sps:$4 sm:$0xff] (!%p3111_p13)  }
  0xbb   : > { %807 = vmatprep.mubr.bf16.mxu0 %v3559_v13  ;;  %847 = vmatprep.mubr.bf16.mxu1 %v3565_v16  ;;  %v3539_v22 = vld [vmem:[%s4320_s12 + $0xa4] ss:$8 sps:$4 sm:$0xff]   ;;  %v3542_v24 = vld [vmem:[%s4320_s12 + $0xb4] ss:$8 sps:$4 sm:$0xff]   ;;  %v3544_v25 = vld [vmem:[%s4320_s12 + $0xb0] ss:$8 sps:$4 sm:$0xff]  }
  0xbc   : > { %v3545_v26 = vld [vmem:[%s4320_s12 + $0xc4] ss:$8 sps:$4 sm:$0xff]   ;;  %v3547_v27 = vld [vmem:[%s4320_s12 + $0xc0] ss:$8 sps:$4 sm:$0xff]   ;;  %v3548_v28 = vld [vmem:[%s4320_s12 + $0xd4] ss:$8 sps:$4 sm:$0xff]  }
  0xbd   : > { %780 = vmatpush1.bf16.msra.mxu0 %v3517_v5  ;;  %3331 = vmatpush1.bf16.msra.mxu1 %v3517_v5  ;;  %v3550_v29 = vld [vmem:[%s4320_s12 + $0xd0] ss:$8 sps:$4 sm:$0xff]   ;;  %v3551_v30 = vld [vmem:[%s4320_s12 + $0xe4] ss:$8 sps:$4 sm:$0xff]   ;;  %v3553_v31 = vld [vmem:[%s4320_s12 + $0xe0] ss:$8 sps:$4 sm:$0xff]  }
  0xbe   : > { %781 = vmatprep.subr.bf16.mxu0 %v3518_v6  ;;  %3316 = vmatprep.subr.bf16.mxu1 %v3518_v6  ;;  %v3554_v32 = vld [vmem:[%s4320_s12 + $0xf4] ss:$8 sps:$4 sm:$0xff]   ;;  %v3556_v33 = vld [vmem:[%s4320_s12 + $0xf0] ss:$8 sps:$4 sm:$0xff]   ;;  %v3557_v34 = vld [vmem:[#allocation4] ss:$8 sps:$4 sm:$0xff]  }
  0xbf   : > { %v3563_v35 = vld [vmem:[#allocation4 + $0x40] ss:$8 sps:$4 sm:$0xff]   ;;  %v3560_v36 = vld [vmem:[#allocation4 + $0x14] ss:$8 sps:$4 sm:$0xff]   ;;  %v3562_v38 = vld [vmem:[#allocation4 + $0x10] ss:$8 sps:$4 sm:$0xff]  }
  0xc0   : > { %v3569_v37 = vld [vmem:[#allocation4 + $0x54] ss:$8 sps:$4 sm:$0xff]   ;;  %v3571_v39 = vld [vmem:[#allocation4 + $0x50] ss:$8 sps:$4 sm:$0xff]   ;;  %v3566_v40 = vld [vmem:[#allocation4 + $0x24] ss:$8 sps:$4 sm:$0xff]  }
  0xc1   : > { %782 = vmatpush1.bf16.msra.mxu0 %v3520_v7  ;;  %3332 = vmatpush1.bf16.msra.mxu1 %v3520_v7  ;;  %v3575_v41 = vld [vmem:[#allocation4 + $0x64] ss:$8 sps:$4 sm:$0xff]   ;;  %v3568_v42 = vld [vmem:[#allocation4 + $0x20] ss:$8 sps:$4 sm:$0xff]   ;;  %v3572_v44 = vld [vmem:[#allocation4 + $0x34] ss:$8 sps:$4 sm:$0xff]  }
  0xc2   : > { %783 = vmatprep.subr.bf16.mxu0 %v3521_v8  ;;  %3317 = vmatprep.subr.bf16.mxu1 %v3521_v8  ;;  %v3577_v43 = vld [vmem:[#allocation4 + $0x60] ss:$8 sps:$4 sm:$0xff]   ;;  %v3578_v45 = vld [vmem:[#allocation4 + $0x74] ss:$8 sps:$4 sm:$0xff]   ;;  %v3574_v46 = vld [vmem:[#allocation4 + $0x30] ss:$8 sps:$4 sm:$0xff]  }
  0xc3   : > { %v3580_v47 = vld [vmem:[#allocation4 + $0x70] ss:$8 sps:$4 sm:$0xff]   ;;  %s4593_s25 = sshra.s32 %s3160_s13, 7 }
  0xc4   : > { %s891_s20 = scalar_lea.vmem %s5140_s2, %s4593_s25  ;;  %s893_s6 = scalar_lea.vmem %s5141_s3, %s4593_s25 }
  0xc5   : > { %784 = vmatpush1.bf16.msra.mxu0 %v3523_v9  ;;  %3333 = vmatpush1.bf16.msra.mxu1 %v3523_v9  ;;  %s3161_s14 = sshll.u32 %s4593_s25, 3 }
  0xc6   : > { %785 = vmatprep.subr.bf16.mxu0 %v3524_v10  ;;  %3318 = vmatprep.subr.bf16.mxu1 %v3524_v10  ;;  %s1208_s27 = scalar_lea.vmem [#allocation2], %s3161_s14 }
  0xc9   : > { %786 = vmatpush1.bf16.msra.mxu0 %v3526_v11  ;;  %3334 = vmatpush1.bf16.msra.mxu1 %v3526_v11 }
  0xca   : > { %787 = vmatprep.subr.bf16.mxu0 %v3527_v12  ;;  %3319 = vmatprep.subr.bf16.mxu1 %v3527_v12 }
  0xcd   : > { %788 = vmatpush1.bf16.msra.mxu0 %v3529_v14  ;;  %3335 = vmatpush1.bf16.msra.mxu1 %v3529_v14 }
  0xce   : > { %789 = vmatprep.subr.bf16.mxu0 %v3530_v15  ;;  %3320 = vmatprep.subr.bf16.mxu1 %v3530_v15 }
  0xd1   : > { %790 = vmatpush1.bf16.msra.mxu0 %v3532_v17  ;;  %3336 = vmatpush1.bf16.msra.mxu1 %v3532_v17 }
  0xd2   : > { %791 = vmatprep.subr.bf16.mxu0 %v3533_v18  ;;  %3321 = vmatprep.subr.bf16.mxu1 %v3533_v18 }
  0xd5   : > { %792 = vmatpush1.bf16.msra.mxu0 %v3535_v19  ;;  %3337 = vmatpush1.bf16.msra.mxu1 %v3535_v19 }
  0xd6   : > { %793 = vmatprep.subr.bf16.mxu0 %v3536_v20  ;;  %3322 = vmatprep.subr.bf16.mxu1 %v3536_v20 }
  0xd9   : > { %794 = vmatpush1.bf16.msra.mxu0 %v3538_v21  ;;  %3338 = vmatpush1.bf16.msra.mxu1 %v3538_v21 }
  0xda   : > { %795 = vmatprep.subr.bf16.mxu0 %v3539_v22  ;;  %3323 = vmatprep.subr.bf16.mxu1 %v3539_v22 }
  0xdd   : > { %796 = vmatpush1.bf16.msra.mxu0 %v3541_v23  ;;  %3339 = vmatpush1.bf16.msra.mxu1 %v3541_v23 }
  0xde   : > { %797 = vmatprep.subr.bf16.mxu0 %v3542_v24  ;;  %3324 = vmatprep.subr.bf16.mxu1 %v3542_v24 }
  0xe1   : > { %798 = vmatpush1.bf16.msra.mxu0 %v3544_v25  ;;  %3340 = vmatpush1.bf16.msra.mxu1 %v3544_v25 }
  0xe2   : > { %799 = vmatprep.subr.bf16.mxu0 %v3545_v26  ;;  %3325 = vmatprep.subr.bf16.mxu1 %v3545_v26 }
  0xe5   : > { %800 = vmatpush1.bf16.msra.mxu0 %v3547_v27  ;;  %3341 = vmatpush1.bf16.msra.mxu1 %v3547_v27 }
  0xe6   : > { %801 = vmatprep.subr.bf16.mxu0 %v3548_v28  ;;  %3326 = vmatprep.subr.bf16.mxu1 %v3548_v28 }
  0xe9   : > { %802 = vmatpush1.bf16.msra.mxu0 %v3550_v29  ;;  %3342 = vmatpush1.bf16.msra.mxu1 %v3550_v29 }
  0xea   : > { %803 = vmatprep.subr.bf16.mxu0 %v3551_v30  ;;  %3327 = vmatprep.subr.bf16.mxu1 %v3551_v30 }
  0xed   : > { %804 = vmatpush1.bf16.msra.mxu0 %v3553_v31  ;;  %3343 = vmatpush1.bf16.msra.mxu1 %v3553_v31 }
  0xee   : > { %805 = vmatprep.subr.bf16.mxu0 %v3554_v32  ;;  %3328 = vmatprep.subr.bf16.mxu1 %v3554_v32 }
  0xf1   : > { %806 = vmatpush1.bf16.msra.mxu0 %v3556_v33  ;;  %3344 = vmatpush1.bf16.msra.mxu1 %v3556_v33 }
  0xf4   : > { %808 = vmatmul.mubr.bf16.vlgmr.msra.gmra.mrb[0].mxu0 %v3557_v34  ;;  %848 = vmatmul.mubr.bf16.vlgmr.msra.gmra.mrb[0].mxu1 %v3563_v35 }
  0xf5   : > { %817 = vmatprep.mubr.bf16.mxu0 %v3560_v36  ;;  %857 = vmatprep.mubr.bf16.mxu1 %v3569_v37 }
  0xfc   : > { %818 = vmatmul.mubr.bf16.gmra.mrb[4].mxu0 %v3562_v38  ;;  %858 = vmatmul.mubr.bf16.gmra.mrb[4].mxu1 %v3571_v39 }
  0xfd   : > { %827 = vmatprep.mubr.bf16.mxu0 %v3566_v40  ;;  %867 = vmatprep.mubr.bf16.mxu1 %v3575_v41 }
 0x104   : > { %828 = vmatmul.mubr.bf16.gmra.mrb[8].mxu0 %v3568_v42  ;;  %868 = vmatmul.mubr.bf16.gmra.mrb[8].mxu1 %v3577_v43 }
 0x105   : > { %837 = vmatprep.mubr.bf16.mxu0 %v3572_v44  ;;  %877 = vmatprep.mubr.bf16.mxu1 %v3578_v45 }
 0x10c   : > { %838 = vmatmul.mubr.bf16.gmra.mrb[12].mxu0 %v3574_v46  ;;  %878 = vmatmul.mubr.bf16.gmra.mrb[12].mxu1 %v3580_v47 }
 0x1c7   : > { %v4372_v48 = vpop.f32.mrb[0].mxu0  ;;  %v4374_v49 = vpop.f32.mrb[0].mxu1 }
 0x1c8   : > { %v4376_v50 = vpop.f32.mrb[1].mxu0  ;;  %v4378_v51 = vpop.f32.mrb[1].mxu1 }
 0x1c9   : > { %v4380_v52 = vpop.f32.mrb[2].mxu0  ;;  %v4382_v53 = vpop.f32.mrb[2].mxu1 }
 0x1ca   : > { %v895_v54 = vadd.f32 %v4380_v52, %v4372_v48  ;;  %v4386_v55 = vpop.f32.mrb[3].mxu0  ;;  %v4388_v56 = vpop.f32.mrb[3].mxu1 }
 0x1cb   : > { %v916_v57 = vadd.f32 %v4386_v55, %v4376_v50 }
 0x1cf   : > { %v4392_v58 = vpop.f32.mrb[4].mxu0  ;;  %v4394_v59 = vpop.f32.mrb[4].mxu1 }
 0x1d0   : > { %v896_v60 = vadd.f32 %v895_v54, %v4392_v58  ;;  %v4397_v61 = vpop.f32.mrb[5].mxu0  ;;  %v4399_v62 = vpop.f32.mrb[5].mxu1 }
 0x1d1   : > { %v917_v63 = vadd.f32 %v916_v57, %v4397_v61  ;;  %v823_v0 = vpop.f32.mrb[6].mxu0  ;;  %v4402_v1 = vpop.f32.mrb[6].mxu1 }
 0x1d2   : > { %v897_v2 = vadd.f32 %v896_v60, %v823_v0  ;;  %v4404_v3 = vpop.f32.mrb[7].mxu0  ;;  %v4406_v4 = vpop.f32.mrb[7].mxu1 }
 0x1d3   : > { %v918_v5 = vadd.f32 %v917_v63, %v4404_v3 }
 0x1d7   : > { %v829_v6 = vpop.f32.mrb[8].mxu0  ;;  %v4409_v7 = vpop.f32.mrb[8].mxu1 }
 0x1d8   : > { %v898_v8 = vadd.f32 %v897_v2, %v829_v6  ;;  %v4411_v9 = vpop.f32.mrb[9].mxu0  ;;  %v4413_v10 = vpop.f32.mrb[9].mxu1 }
 0x1d9   : > { %v919_v11 = vadd.f32 %v918_v5, %v4411_v9  ;;  %v833_v12 = vpop.f32.mrb[10].mxu0  ;;  %v873_v13 = vpop.f32.mrb[10].mxu1 }
 0x1da   : > { %v899_v14 = vadd.f32 %v898_v8, %v833_v12  ;;  %v4416_v15 = vpop.f32.mrb[11].mxu0  ;;  %v4418_v16 = vpop.f32.mrb[11].mxu1 }
 0x1db   : > { %v920_v17 = vadd.f32 %v919_v11, %v4416_v15 }
 0x1df   : > { %v839_v18 = vpop.f32.mrb[12].mxu0  ;;  %v879_v19 = vpop.f32.mrb[12].mxu1 }
 0x1e0   : > { %v900_v20 = vadd.f32 %v899_v14, %v839_v18  ;;  %v4421_v21 = vpop.f32.mrb[13].mxu0  ;;  %v4423_v22 = vpop.f32.mrb[13].mxu1 }
 0x1e1   : > { %v921_v23 = vadd.f32 %v920_v17, %v4421_v21  ;;  %v843_v24 = vpop.f32.mrb[14].mxu0  ;;  %v883_v25 = vpop.f32.mrb[14].mxu1 }
 0x1e2   : > { %v901_v26 = vadd.f32 %v900_v20, %v843_v24  ;;  %v845_v27 = vpop.f32.mrb[15].mxu0  ;;  %v4426_v28 = vpop.f32.mrb[15].mxu1 }
 0x1e3   : > { %v922_v29 = vadd.f32 %v921_v23, %v845_v27 }
 0x1e4   : > { %v902_v30 = vadd.f32 %v901_v26, %v4374_v49 }
 0x1e5   : > { %v923_v31 = vadd.f32 %v922_v29, %v4378_v51 }
 0x1e6   : > { %v903_v32 = vadd.f32 %v902_v30, %v4382_v53 }
 0x1e7   : > { %v924_v33 = vadd.f32 %v923_v31, %v4388_v56 }
 0x1e8   : > { %v904_v34 = vadd.f32 %v903_v32, %v4394_v59 }
 0x1e9   : > { %v925_v35 = vadd.f32 %v924_v33, %v4399_v62 }
 0x1ea   : > { %v905_v36 = vadd.f32 %v904_v34, %v4402_v1 }
 0x1eb   : > { %v926_v37 = vadd.f32 %v925_v35, %v4406_v4 }
 0x1ec   : > { %v906_v38 = vadd.f32 %v905_v36, %v4409_v7 }
 0x1ed   : > { %v927_v39 = vadd.f32 %v926_v37, %v4413_v10 }
 0x1ee   : > { %v907_v40 = vadd.f32 %v906_v38, %v873_v13 }
 0x1ef   : > { %v928_v41 = vadd.f32 %v927_v39, %v4418_v16 }
 0x1f0   : > { %v908_v42 = vadd.f32 %v907_v40, %v879_v19 }
 0x1f1   : > { %v929_v43 = vadd.f32 %v928_v41, %v4423_v22 }
 0x1f2   : > { %v909_v44 = vadd.f32 %v908_v42, %v883_v25 }
 0x1f3   : > { %v930_v45 = vadd.f32 %v929_v43, %v4426_v28 }
 0x1f4   : > { %v910_v46 = vrot.slane %v909_v44, 4 }
 0x1f5   : > { %v931_v47 = vrot.slane %v930_v45, 4 }
 0x1f6   : > { %v911_v54 = vadd.f32 %v910_v46, %v909_v44 }
 0x1f7   : > { %v932_v57 = vadd.f32 %v931_v47, %v930_v45 }
 0x1f8   : > { %v912_v60 = vrot.slane %v911_v54, 2 }
 0x1f9   : > { %v933_v63 = vrot.slane %v932_v57, 2 }
 0x1fa   : > { %v913_v2 = vadd.f32 %v912_v60, %v911_v54 }
 0x1fb   : > { %v934_v5 = vadd.f32 %v933_v63, %v932_v57 }
 0x1fc   : > { %v914_v8 = vrot.slane %v913_v2, 1 }
 0x1fd   : > { %v935_v11 = vrot.slane %v934_v5, 1 }
 0x1fe   : > { %v915_v14 = vadd.f32 %v914_v8, %v913_v2 }
 0x1ff   : > { %v936_v20 = vadd.f32 %v935_v11, %v934_v5 }
 0x200   : > { %v938_v17 = vmul.f32 0.0078125, %v915_v14 }
 0x202   : > { %v4442_v23 = vsub.f32 %v4372_v48, %v938_v17  ;;  %v4445_v26 = vsub.f32 %v4380_v52, %v938_v17  ;;  %v4448_v29 = vsub.f32 %v4392_v58, %v938_v17  ;;  %v4450_v30 = vsub.f32 %v823_v0, %v938_v17 }
 0x203   : > { %v4452_v31 = vsub.f32 %v829_v6, %v938_v17  ;;  %v4454_v32 = vsub.f32 %v833_v12, %v938_v17  ;;  %v4456_v33 = vsub.f32 %v839_v18, %v938_v17  ;;  %v4458_v34 = vsub.f32 %v843_v24, %v938_v17 }
 0x204   : > { %v4461_v35 = vsub.f32 %v4374_v49, %v938_v17  ;;  %v4464_v48 = vsub.f32 %v4382_v53, %v938_v17  ;;  %v4467_v52 = vsub.f32 %v4394_v59, %v938_v17  ;;  %v4470_v58 = vsub.f32 %v4402_v1, %v938_v17 }
 0x205   : > { %v4473_v0 = vsub.f32 %v4409_v7, %v938_v17  ;;  %v4475_v6 = vsub.f32 %v873_v13, %v938_v17  ;;  %v4477_v12 = vsub.f32 %v879_v19, %v938_v17  ;;  %v4479_v18 = vsub.f32 %v883_v25, %v938_v17 }
 0x206   : > { %v972_v49 = vmul.f32 %v4442_v23, %v4442_v23  ;;  %v974_v53 = vmul.f32 %v4445_v26, %v4445_v26  ;;  %v939_v59 = vmul.f32 0.0078125, %v936_v20  ;;  %v976_v1 = vmul.f32 %v4448_v29, %v4448_v29 }
 0x207   : > { %v978_v7 = vmul.f32 %v4450_v30, %v4450_v30  ;;  %v984_v42 = vmul.f32 %v4456_v33, %v4456_v33  ;;  %v988_v54 = vmul.f32 %v4461_v35, %v4461_v35  ;;  %v990_v2 = vmul.f32 %v4464_v48, %v4464_v48 }
 0x208   : > { %v1004_v24 = vadd.f32 %v974_v53, %v972_v49  ;;  %v4490_v13 = vsub.f32 %v4376_v50, %v939_v59  ;;  %v4493_v19 = vsub.f32 %v4386_v55, %v939_v59  ;;  %v4496_v25 = vsub.f32 %v4397_v61, %v939_v59 }
 0x209   : > { %v4499_v36 = vsub.f32 %v4404_v3, %v939_v59  ;;  %v4502_v37 = vsub.f32 %v4411_v9, %v939_v59  ;;  %v4505_v38 = vsub.f32 %v4416_v15, %v939_v59  ;;  %v4508_v39 = vsub.f32 %v4421_v21, %v939_v59 }
 0x20a   : > { %v1005_v50 = vadd.f32 %v1004_v24, %v976_v1  ;;  %v4510_v40 = vsub.f32 %v845_v27, %v939_v59  ;;  %v4513_v55 = vsub.f32 %v4378_v51, %v939_v59  ;;  %v4516_v61 = vsub.f32 %v4388_v56, %v939_v59 }
 0x20b   : > { %v4519_v3 = vsub.f32 %v4399_v62, %v939_v59  ;;  %v4522_v9 = vsub.f32 %v4406_v4, %v939_v59  ;;  %v4525_v15 = vsub.f32 %v4413_v10, %v939_v59  ;;  %v4528_v21 = vsub.f32 %v4418_v16, %v939_v59 }
 0x20c   : > { %v980_v27 = vmul.f32 %v4452_v31, %v4452_v31  ;;  %v1006_v51 = vadd.f32 %v1005_v50, %v978_v7  ;;  %v4533_v41 = vsub.f32 %v4423_v22, %v939_v59  ;;  %v4536_v56 = vsub.f32 %v4426_v28, %v939_v59 }
 0x20d   : > { %v973_v62 = vmul.f32 %v4490_v13, %v4490_v13  ;;  %v975_v4 = vmul.f32 %v4493_v19, %v4493_v19  ;;  %v982_v10 = vmul.f32 %v4454_v32, %v4454_v32  ;;  %v977_v22 = vmul.f32 %v4496_v25, %v4496_v25 }
 0x20e   : > { %v1007_v16 = vadd.f32 %v1006_v51, %v980_v27  ;;  %v986_v28 = vmul.f32 %v4458_v34, %v4458_v34  ;;  %v979_v46 = vmul.f32 %v4499_v36, %v4499_v36  ;;  %v981_v60 = vmul.f32 %v4502_v37, %v4502_v37 }
 0x20f   : > { %v1025_v44 = vadd.f32 %v975_v4, %v973_v62  ;;  %v983_v8 = vmul.f32 %v4505_v38, %v4505_v38  ;;  %v992_v14 = vmul.f32 %v4467_v52, %v4467_v52  ;;  %v985_v20 = vmul.f32 %v4508_v39, %v4508_v39 }
 0x210   : > { %v1008_v43 = vadd.f32 %v1007_v16, %v982_v10  ;;  %v994_v53 = vmul.f32 %v4470_v58, %v4470_v58  ;;  %v987_v1 = vmul.f32 %v4510_v40, %v4510_v40  ;;  %v996_v24 = vmul.f32 %v4473_v0, %v4473_v0 }
 0x211   : > { %v1026_v47 = vadd.f32 %v1025_v44, %v977_v22  ;;  %v989_v27 = vmul.f32 %v4513_v55, %v4513_v55  ;;  %v998_v62 = vmul.f32 %v4475_v6, %v4475_v6  ;;  %v991_v10 = vmul.f32 %v4516_v61, %v4516_v61 }
 0x212   : > { %v1009_v45 = vadd.f32 %v1008_v43, %v984_v42  ;;  %v1000_v42 = vmul.f32 %v4477_v12, %v4477_v12  ;;  %v993_v22 = vmul.f32 %v4519_v3, %v4519_v3 }
 0x213   : > { %v1027_v63 = vadd.f32 %v1026_v47, %v979_v46  ;;  %v995_v46 = vmul.f32 %v4522_v9, %v4522_v9 }
 0x214   : > { %v1010_v57 = vadd.f32 %v1009_v45, %v986_v28  ;;  %v1002_v28 = vmul.f32 %v4479_v18, %v4479_v18 }
 0x215   : > { %v1028_v11 = vadd.f32 %v1027_v63, %v981_v60 }
 0x216   : > { %v1011_v5 = vadd.f32 %v1010_v57, %v988_v54  ;;  %v997_v57 = vmul.f32 %v4525_v15, %v4525_v15 }
 0x217   : > { %v1029_v49 = vadd.f32 %v1028_v11, %v983_v8  ;;  %v1001_v11 = vmul.f32 %v4533_v41, %v4533_v41 }
 0x218   : > { %v1012_v17 = vadd.f32 %v1011_v5, %v990_v2  ;;  %v999_v2 = vmul.f32 %v4528_v21, %v4528_v21 }
 0x219   : > { %v1030_v7 = vadd.f32 %v1029_v49, %v985_v20  ;;  %v1003_v20 = vmul.f32 %v4536_v56, %v4536_v56 }
 0x21a   : > { %v1013_v59 = vadd.f32 %v1012_v17, %v992_v14 }
 0x21b   : > { %v1031_v51 = vadd.f32 %v1030_v7, %v987_v1 }
 0x21c   : > { %v1014_v50 = vadd.f32 %v1013_v59, %v994_v53 }
 0x21d   : > { %v1032_v16 = vadd.f32 %v1031_v51, %v989_v27 }
 0x21e   : > { %v1015_v4 = vadd.f32 %v1014_v50, %v996_v24 }
 0x21f   : > { %v1033_v44 = vadd.f32 %v1032_v16, %v991_v10 }
 0x220   : > { %v1016_v43 = vadd.f32 %v1015_v4, %v998_v62 }
 0x221   : > { %v1034_v47 = vadd.f32 %v1033_v44, %v993_v22 }
 0x222   : > { %v1017_v45 = vadd.f32 %v1016_v43, %v1000_v42 }
 0x223   : > { %v1035_v60 = vadd.f32 %v1034_v47, %v995_v46  ;;  %v1060_v46 = vlaneseq }
 0x224   : > { %v1018_v54 = vadd.f32 %v1017_v45, %v1002_v28  ;;  %v4006_v28 = vmov 1966171168  }
 0x225   : > { %v1036_v5 = vadd.f32 %v1035_v60, %v997_v57  ;;  %v1058_v45 = vunpack.c.l.s4 %v4006_v28 }
 0x226   : > { %v1019_v63 = vrot.slane %v1018_v54, 4 }
 0x227   : > { %v1037_v14 = vadd.f32 %v1036_v5, %v999_v2  ;;  %v1059_v47 = vunpack.c.0.s8 %v1058_v45 }
 0x228   : > { %v1020_v8 = vadd.f32 %v1019_v63, %v1018_v54  ;;  %v1061_v54 = vshrl.u32 %v1060_v46, 7 }
 0x229   : > { %v1038_v49 = vadd.f32 %v1037_v14, %v1001_v11 }
 0x22a   : > { %v1021_v17 = vrot.slane %v1020_v8, 2  ;;  %v1062_v60 = vsub.s32 %v1059_v47, %v1061_v54  ;;  %v1076_v14 = vsub.s32 0, %v1061_v54 }
 0x22b   : > { %v1039_v59 = vadd.f32 %v1038_v49, %v1003_v20  ;;  %v894_v20 = vld [vmem:[%s893_s6] sm:$0x3] }
 0x22c   : > { %v1022_v53 = vadd.f32 %v1021_v17, %v1020_v8  ;;  %v892_v8 = vld [vmem:[%s891_s20] sm:$0x3]  ;;  %v1080_v17 = vsub.s32 1, %v1061_v54 }
 0x22d   : > { %v1040_v7 = vrot.slane %v1039_v59, 4 }
 0x22e   : > { %v1023_v1 = vrot.slane %v1022_v53, 1 }
 0x22f   : > { %v1041_v50 = vadd.f32 %v1040_v7, %v1039_v59  ;;  %v4605_v7 = vrot.slane %v894_v20, %v1080_v17 }
 0x230   : > { %v1024_v24 = vadd.f32 %v1023_v1, %v1022_v53  ;;  %v4603_v1 = vrot.slane %v894_v20, %v1076_v14 }
 0x231   : > { %v1042_v51 = vrot.slane %v1041_v50, 2 }
 0x232   : > { %v1046_v27 = vmul.f32 0.0078125, %v1024_v24 }
 0x233   : > { %v1043_v62 = vadd.f32 %v1042_v51, %v1041_v50 }
 0x234   : > { %v1048_v4 = vmax.f32 %v1046_v27, 0.0 }
 0x235   : > { %v1044_v10 = vrot.slane %v1043_v62, 1 }
 0x236   : > { %v1050_v42 = vadd.f32 1e-05, %v1048_v4 }
 0x237   : > { %v1045_v16 = vadd.f32 %v1044_v10, %v1043_v62 }
 0x238   : > { %3581 = vrsqrt.f32 %v1050_v42 }
 0x239   : > { %v1047_v43 = vmul.f32 0.0078125, %v1045_v16 }
 0x23b   : > { %v1049_v22 = vmax.f32 %v1047_v43, 0.0 }
 0x23d   : > { %v1051_v44 = vadd.f32 1e-05, %v1049_v22 }
 0x23f   : > { %3583 = vrsqrt.f32 %v1051_v44 }
 0x242   : > { %v3582_v57 = vpop.eup %3581 }
 0x249   : > { %v3584_v63 = vpop.eup %3583 }
 0x24a   : > { %v1056_v2 = vcombine.low %v3582_v57, %v3584_v63 }
 0x24c   : > { %v1063_v5 = vrot.slane %v1056_v2, %v1062_v60 }
 0x24e   : > { %v1070_v11 = vrot.slane %v1063_v5, %v1062_v60 }
 0x250   : > { %v1072_v49 = vmul.f32 %v1070_v11, %v892_v8 }
 0x252   : > { %v1077_v53 = vrot.slane %v1072_v49, %v1076_v14  ;;  %v1081_v59 = vrot.slane %v1072_v49, %v1080_v17 }
 0x254   : > { %v1084_v24 = vmul.f32 %v1077_v53, %v4442_v23  ;;  %v1085_v50 = vmul.f32 %v1081_v59, %v4490_v13  ;;  %v1086_v27 = vmul.f32 %v1077_v53, %v4445_v26  ;;  %v1087_v51 = vmul.f32 %v1081_v59, %v4493_v19 }
 0x255   : > { %v1088_v62 = vmul.f32 %v1077_v53, %v4448_v29  ;;  %v1089_v4 = vmul.f32 %v1081_v59, %v4496_v25  ;;  %v1090_v10 = vmul.f32 %v1077_v53, %v4450_v30  ;;  %v1091_v16 = vmul.f32 %v1081_v59, %v4499_v36 }
 0x256   : > { %v1092_v42 = vmul.f32 %v1077_v53, %v4452_v31  ;;  %v1093_v43 = vmul.f32 %v1081_v59, %v4502_v37  ;;  %v1094_v23 = vmul.f32 %v1077_v53, %v4454_v32  ;;  %v1095_v13 = vmul.f32 %v1081_v59, %v4505_v38 }
 0x257   : > { %v1096_v26 = vmul.f32 %v1077_v53, %v4456_v33  ;;  %v1097_v19 = vmul.f32 %v1081_v59, %v4508_v39  ;;  %v1098_v29 = vmul.f32 %v1077_v53, %v4458_v34  ;;  %v1099_v25 = vmul.f32 %v1081_v59, %v4510_v40 }
 0x258   : > { %v1100_v30 = vmul.f32 %v1077_v53, %v4461_v35  ;;  %v1101_v36 = vmul.f32 %v1081_v59, %v4513_v55  ;;  %v1102_v31 = vmul.f32 %v1077_v53, %v4464_v48  ;;  %v1103_v37 = vmul.f32 %v1081_v59, %v4516_v61 }
 0x259   : > { %v1104_v32 = vmul.f32 %v1077_v53, %v4467_v52  ;;  %v1105_v38 = vmul.f32 %v1081_v59, %v4519_v3  ;;  %v1106_v33 = vmul.f32 %v1077_v53, %v4470_v58  ;;  %v1107_v39 = vmul.f32 %v1081_v59, %v4522_v9 }
 0x25a   : > { %v1108_v34 = vmul.f32 %v1077_v53, %v4473_v0  ;;  %v1109_v40 = vmul.f32 %v1081_v59, %v4525_v15  ;;  %v1110_v35 = vmul.f32 %v1077_v53, %v4475_v6  ;;  %v1111_v55 = vmul.f32 %v1081_v59, %v4528_v21 }
 0x25b   : > { %v1112_v48 = vmul.f32 %v1077_v53, %v4477_v12  ;;  %v1113_v61 = vmul.f32 %v1081_v59, %v4533_v41  ;;  %v1114_v52 = vmul.f32 %v1077_v53, %v4479_v18  ;;  %v1115_v3 = vmul.f32 %v1081_v59, %v4536_v56 }
 0x25c   : > { %v4640_v58 = vadd.f32 %v4603_v1, %v1084_v24  ;;  %v4643_v9 = vadd.f32 %v4605_v7, %v1085_v50  ;;  %v4646_v0 = vadd.f32 %v4603_v1, %v1086_v27  ;;  %v4649_v6 = vadd.f32 %v4605_v7, %v1087_v51 }
 0x25d   : > { %v4652_v12 = vadd.f32 %v4603_v1, %v1088_v62  ;;  %v4655_v15 = vadd.f32 %v4605_v7, %v1089_v4  ;;  %v1133_v18 = vadd.f32 %v4603_v1, %v1090_v10  ;;  %v1134_v21 = vadd.f32 %v4605_v7, %v1091_v16 }
 0x25e   : > { %v1135_v41 = vadd.f32 %v4603_v1, %v1092_v42  ;;  %v1136_v56 = vadd.f32 %v4605_v7, %v1093_v43  ;;  %v1137_v22 = vadd.f32 %v4603_v1, %v1094_v23  ;;  %v1138_v44 = vadd.f32 %v4605_v7, %v1095_v13 }
 0x25f   : > { %v1139_v28 = vadd.f32 %v4603_v1, %v1096_v26  ;;  %v1140_v45 = vadd.f32 %v4605_v7, %v1097_v19  ;;  %v1141_v46 = vadd.f32 %v4603_v1, %v1098_v29  ;;  %v1142_v47 = vadd.f32 %v4605_v7, %v1099_v25 }
 0x260   : > { %v1143_v54 = vadd.f32 %v4603_v1, %v1100_v30  ;;  %v1144_v57 = vadd.f32 %v4605_v7, %v1101_v36  ;;  %v1145_v60 = vadd.f32 %v4603_v1, %v1102_v31  ;;  %v1146_v63 = vadd.f32 %v4605_v7, %v1103_v37 }
 0x261   : > { %v1147_v2 = vadd.f32 %v4603_v1, %v1104_v32  ;;  %v1148_v5 = vadd.f32 %v4605_v7, %v1105_v38  ;;  %v1149_v8 = vadd.f32 %v4603_v1, %v1106_v33  ;;  %v1150_v11 = vadd.f32 %v4605_v7, %v1107_v39 }
 0x262   : > { %v1151_v14 = vadd.f32 %v4603_v1, %v1108_v34  ;;  %v1152_v17 = vadd.f32 %v4605_v7, %v1109_v40  ;;  %v1153_v20 = vadd.f32 %v4603_v1, %v1110_v35  ;;  %v1154_v49 = vadd.f32 %v4605_v7, %v1111_v55 }
 0x263   : > { %v1155_v53 = vadd.f32 %v4603_v1, %v1112_v48  ;;  %v1156_v59 = vadd.f32 %v4605_v7, %v1113_v61  ;;  %v1157_v24 = vadd.f32 %v4603_v1, %v1114_v52  ;;  %v1158_v50 = vadd.f32 %v4605_v7, %v1115_v3 }
 0x264   : > { %v1159_v27 = vmax.f32 %v4640_v58, 0.0  ;;  %v1160_v51 = vmax.f32 %v4643_v9, 0.0  ;;  %v1161_v62 = vmax.f32 %v4646_v0, 0.0  ;;  %v1162_v4 = vmax.f32 %v4649_v6, 0.0 }
 0x265   : > { %v1163_v10 = vmax.f32 %v4652_v12, 0.0  ;;  %v1164_v16 = vmax.f32 %v4655_v15, 0.0  ;;  %v1165_v42 = vmax.f32 %v1133_v18, 0.0  ;;  %v1166_v43 = vmax.f32 %v1134_v21, 0.0 }
 0x266   : > { %v1167_v23 = vmax.f32 %v1135_v41, 0.0  ;;  %v1168_v13 = vmax.f32 %v1136_v56, 0.0  ;;  %v1169_v1 = vmax.f32 %v1137_v22, 0.0  ;;  %v1170_v26 = vmax.f32 %v1138_v44, 0.0 }
 0x267   : > { %v1171_v7 = vmax.f32 %v1139_v28, 0.0  ;;  %v1172_v19 = vmax.f32 %v1140_v45, 0.0  ;;  %v1173_v29 = vmax.f32 %v1141_v46, 0.0  ;;  %v1174_v25 = vmax.f32 %v1142_v47, 0.0 }
 0x268   : > { %v1175_v30 = vmax.f32 %v1143_v54, 0.0  ;;  %v1176_v36 = vmax.f32 %v1144_v57, 0.0  ;;  %v1177_v31 = vmax.f32 %v1145_v60, 0.0  ;;  %v1178_v37 = vmax.f32 %v1146_v63, 0.0 }
 0x269   : > { %v1179_v32 = vmax.f32 %v1147_v2, 0.0  ;;  %v1180_v38 = vmax.f32 %v1148_v5, 0.0  ;;  %v1181_v33 = vmax.f32 %v1149_v8, 0.0  ;;  %v1182_v39 = vmax.f32 %v1150_v11, 0.0 }
 0x26a   : > { %v1183_v34 = vmax.f32 %v1151_v14, 0.0  ;;  %v1184_v40 = vmax.f32 %v1152_v17, 0.0  ;;  %v1185_v35 = vmax.f32 %v1153_v20, 0.0  ;;  %v1186_v55 = vmax.f32 %v1154_v49, 0.0 }
 0x26b   : > { %v1187_v48 = vmax.f32 %v1155_v53, 0.0  ;;  %v1188_v61 = vmax.f32 %v1156_v59, 0.0  ;;  %v1189_v52 = vmax.f32 %v1157_v24, 0.0  ;;  %v1190_v3 = vmax.f32 %v1158_v50, 0.0 }
 0x26c   : > { %v1191_v58 = vpack.c.bf16 %v1161_v62, %v1159_v27  ;;  %v1192_v9 = vpack.c.bf16 %v1162_v4, %v1160_v51  ;;  %v1193_v0 = vpack.c.bf16 %v1165_v42, %v1163_v10  ;;  %v1194_v6 = vpack.c.bf16 %v1166_v43, %v1164_v16 }
 0x26d   : > { %v1195_v12 = vpack.c.bf16 %v1169_v1, %v1167_v23  ;;  %v1196_v15 = vpack.c.bf16 %v1170_v26, %v1168_v13  ;;  %v1197_v18 = vpack.c.bf16 %v1173_v29, %v1171_v7  ;;  %v1198_v21 = vpack.c.bf16 %v1174_v25, %v1172_v19 }
 0x26e   : > { %v1199_v41 = vpack.c.bf16 %v1177_v31, %v1175_v30  ;;  %v1200_v56 = vpack.c.bf16 %v1178_v37, %v1176_v36  ;;  %v1201_v22 = vpack.c.bf16 %v1181_v33, %v1179_v32  ;;  %v1202_v44 = vpack.c.bf16 %v1182_v39, %v1180_v38  ;;  %1209 = vst [vmem:[%s1208_s27] sm:$0xff] %v1191_v58 }
 0x26f   : > { %1210 = vst [vmem:[%s1208_s27 + $0x8] sm:$0xff] %v1192_v9  ;;  %1211 = vst [vmem:[%s1208_s27 + $0x20] sm:$0xff] %v1193_v0  ;;  %v1203_v28 = vpack.c.bf16 %v1185_v35, %v1183_v34  ;;  %v1204_v45 = vpack.c.bf16 %v1186_v55, %v1184_v40  ;;  %v1205_v46 = vpack.c.bf16 %v1189_v52, %v1187_v48 }
 0x270   : > { %1212 = vst [vmem:[%s1208_s27 + $0x28] sm:$0xff] %v1194_v6  ;;  %v1206_v47 = vpack.c.bf16 %v1190_v3, %v1188_v61  ;;  %1213 = vst [vmem:[%s1208_s27 + $0x40] sm:$0xff] %v1195_v12 }
 0x271   : > { %1214 = vst [vmem:[%s1208_s27 + $0x48] sm:$0xff] %v1196_v15  ;;  %1215 = vst [vmem:[%s1208_s27 + $0x60] sm:$0xff] %v1197_v18 }
 0x272   : > { %1216 = vst [vmem:[%s1208_s27 + $0x68] sm:$0xff] %v1198_v21  ;;  %1217 = vst [vmem:[%s1208_s27 + $0x80] sm:$0xff] %v1199_v41 }
 0x273   : > { %1218 = vst [vmem:[%s1208_s27 + $0x88] sm:$0xff] %v1200_v56  ;;  %1219 = vst [vmem:[%s1208_s27 + $0xa0] sm:$0xff] %v1201_v22 }
 0x274   : > { %1220 = vst [vmem:[%s1208_s27 + $0xa8] sm:$0xff] %v1202_v44  ;;  %1221 = vst [vmem:[%s1208_s27 + $0xc0] sm:$0xff] %v1203_v28 }
 0x275   : > { %1222 = vst [vmem:[%s1208_s27 + $0xc8] sm:$0xff] %v1204_v45  ;;  %1223 = vst [vmem:[%s1208_s27 + $0xe0] sm:$0xff] %v1205_v46 }
 0x276   : > { %1224 = vst [vmem:[%s1208_s27 + $0xe8] sm:$0xff] %v1206_v47 }
 0x277 PF: > { %p1226_p9 = scmp.lt.s32.totalorder %s4159_s24, 4 }
 0x279   : > { %p1227_p11 = pnand %p3111_p13, %p1226_p9 }
 0x27a   : > { %v3585_v54 = vld [vmem:[%s4327_s10 + $0x4] ss:$8 sps:$4 sm:$0xff] (!%p1227_p11)   ;;  %v3589_v60 = vld [vmem:[%s4327_s10] ss:$8 sps:$4 sm:$0xff] (!%p1227_p11)   ;;  %v3591_v2 = vld [vmem:[%s4327_s10 + $0x14] ss:$8 sps:$4 sm:$0xff] (!%p1227_p11)  }
 0x27b   : > { %1230 = sbr.rel (%p1227_p11) target bundleno = 1104 (0x450), region = 76  ;;  %v3587_v57 = vld [vmem:[%s4327_s10 + $0x104] ss:$8 sps:$4 sm:$0xff] (!%p1227_p11)   ;;  %1647 = vmatprep.subr.bf16.mxu1 (!%p1227_p11), %v3585_v54  ;;  %v3590_v63 = vld [vmem:[%s4327_s10 + $0x100] ss:$8 sps:$4 sm:$0xff] (!%p1227_p11)   ;;  %s3226_s18 = sadd.s32 (!%p1227_p11), 4294967294, %s4159_s24 }
 0x27c   : > { %1760 = vmatprep.subr.bf16.mxu0 (!%p1227_p11), %v3587_v57  ;;  %1648 = vmatpush1.bf16.msra.mxu1 (!%p1227_p11), %v3589_v60  ;;  %v3593_v5 = vld [vmem:[%s4327_s10 + $0x114] ss:$8 sps:$4 sm:$0xff] (!%p1227_p11)   ;;  %v3595_v8 = vld [vmem:[%s4327_s10 + $0x10] ss:$8 sps:$4 sm:$0xff] (!%p1227_p11)   ;;  %v3597_v14 = vld [vmem:[%s4327_s10 + $0x24] ss:$8 sps:$4 sm:$0xff] (!%p1227_p11)  }
 0x27d   : > { %1761 = vmatpush1.bf16.msra.mxu0 (!%p1227_p11), %v3590_v63  ;;  %1649 = vmatprep.subr.bf16.mxu1 (!%p1227_p11), %v3591_v2  ;;  %v3596_v11 = vld [vmem:[%s4327_s10 + $0x110] ss:$8 sps:$4 sm:$0xff] (!%p1227_p11)   ;;  %v3599_v17 = vld [vmem:[%s4327_s10 + $0x124] ss:$8 sps:$4 sm:$0xff] (!%p1227_p11)   ;;  %v3601_v20 = vld [vmem:[%s4327_s10 + $0x20] ss:$8 sps:$4 sm:$0xff] (!%p1227_p11)  }
 0x27e   : > { %1762 = vmatprep.subr.bf16.mxu0 (!%p1227_p11), %v3593_v5  ;;  %v3602_v49 = vld [vmem:[%s4327_s10 + $0x120] ss:$8 sps:$4 sm:$0xff] (!%p1227_p11)   ;;  %v3603_v53 = vld [vmem:[%s4327_s10 + $0x34] ss:$8 sps:$4 sm:$0xff] (!%p1227_p11)   ;;  %v3607_v24 = vld [vmem:[%s4327_s10 + $0x30] ss:$8 sps:$4 sm:$0xff] (!%p1227_p11)  }
 0x27f   : > { %v3605_v59 = vld [vmem:[%s4327_s10 + $0x134] ss:$8 sps:$4 sm:$0xff] (!%p1227_p11)   ;;  %v3608_v50 = vld [vmem:[%s4327_s10 + $0x130] ss:$8 sps:$4 sm:$0xff] (!%p1227_p11)   ;;  %v3609_v27 = vld [vmem:[%s4327_s10 + $0x44] ss:$8 sps:$4 sm:$0xff] (!%p1227_p11)  }
 0x280   : > { %1650 = vmatpush1.bf16.msra.mxu1 (!%p1227_p11), %v3595_v8  ;;  %v3611_v51 = vld [vmem:[%s4327_s10 + $0x144] ss:$8 sps:$4 sm:$0xff] (!%p1227_p11)   ;;  %v3613_v62 = vld [vmem:[%s4327_s10 + $0x40] ss:$8 sps:$4 sm:$0xff] (!%p1227_p11)   ;;  %v3615_v10 = vld [vmem:[%s4327_s10 + $0x54] ss:$8 sps:$4 sm:$0xff] (!%p1227_p11)  }
 0x281   : > { %1763 = vmatpush1.bf16.msra.mxu0 (!%p1227_p11), %v3596_v11  ;;  %1651 = vmatprep.subr.bf16.mxu1 (!%p1227_p11), %v3597_v14  ;;  %v3614_v4 = vld [vmem:[%s4327_s10 + $0x140] ss:$8 sps:$4 sm:$0xff] (!%p1227_p11)   ;;  %v3617_v16 = vld [vmem:[%s4327_s10 + $0x154] ss:$8 sps:$4 sm:$0xff] (!%p1227_p11)   ;;  %v3619_v42 = vld [vmem:[%s4327_s10 + $0x50] ss:$8 sps:$4 sm:$0xff] (!%p1227_p11)  }
 0x282   : > { %1764 = vmatprep.subr.bf16.mxu0 %v3599_v17  ;;  %v3620_v43 = vld [vmem:[%s4327_s10 + $0x150] ss:$8 sps:$4 sm:$0xff]   ;;  %v3621_v23 = vld [vmem:[%s4327_s10 + $0x64] ss:$8 sps:$4 sm:$0xff]   ;;  %v3625_v1 = vld [vmem:[%s4327_s10 + $0x60] ss:$8 sps:$4 sm:$0xff]  }
 0x283   : > { %v3623_v13 = vld [vmem:[%s4327_s10 + $0x164] ss:$8 sps:$4 sm:$0xff]   ;;  %v3626_v26 = vld [vmem:[%s4327_s10 + $0x160] ss:$8 sps:$4 sm:$0xff]   ;;  %v3627_v7 = vld [vmem:[%s4327_s10 + $0x74] ss:$8 sps:$4 sm:$0xff]  }
 0x284   : > { %1652 = vmatpush1.bf16.msra.mxu1 %v3601_v20  ;;  %v3629_v19 = vld [vmem:[%s4327_s10 + $0x174] ss:$8 sps:$4 sm:$0xff]   ;;  %v3631_v29 = vld [vmem:[%s4327_s10 + $0x70] ss:$8 sps:$4 sm:$0xff]   ;;  %v3633_v30 = vld [vmem:[%s4327_s10 + $0x84] ss:$8 sps:$4 sm:$0xff]  }
 0x285   : > { %1765 = vmatpush1.bf16.msra.mxu0 %v3602_v49  ;;  %1653 = vmatprep.subr.bf16.mxu1 %v3603_v53  ;;  %v3632_v25 = vld [vmem:[%s4327_s10 + $0x170] ss:$8 sps:$4 sm:$0xff]   ;;  %v3635_v36 = vld [vmem:[%s4327_s10 + $0x184] ss:$8 sps:$4 sm:$0xff]   ;;  %v3637_v31 = vld [vmem:[%s4327_s10 + $0x80] ss:$8 sps:$4 sm:$0xff]  }
 0x286   : > { %1766 = vmatprep.subr.bf16.mxu0 %v3605_v59  ;;  %v3638_v37 = vld [vmem:[%s4327_s10 + $0x180] ss:$8 sps:$4 sm:$0xff]   ;;  %v3639_v32 = vld [vmem:[%s4327_s10 + $0x94] ss:$8 sps:$4 sm:$0xff]   ;;  %v3643_v33 = vld [vmem:[%s4327_s10 + $0x90] ss:$8 sps:$4 sm:$0xff]  }
 0x287   : > { %v3641_v38 = vld [vmem:[%s4327_s10 + $0x194] ss:$8 sps:$4 sm:$0xff]   ;;  %v3644_v39 = vld [vmem:[%s4327_s10 + $0x190] ss:$8 sps:$4 sm:$0xff]   ;;  %v3645_v34 = vld [vmem:[%s4327_s10 + $0xa4] ss:$8 sps:$4 sm:$0xff]  }
 0x288   : > { %1654 = vmatpush1.bf16.msra.mxu1 %v3607_v24  ;;  %v3647_v40 = vld [vmem:[%s4327_s10 + $0x1a4] ss:$8 sps:$4 sm:$0xff]   ;;  %v3649_v35 = vld [vmem:[%s4327_s10 + $0xa0] ss:$8 sps:$4 sm:$0xff]   ;;  %v3651_v48 = vld [vmem:[%s4327_s10 + $0xb4] ss:$8 sps:$4 sm:$0xff]  }
 0x289   : > { %1767 = vmatpush1.bf16.msra.mxu0 %v3608_v50  ;;  %1655 = vmatprep.subr.bf16.mxu1 %v3609_v27  ;;  %v3650_v55 = vld [vmem:[%s4327_s10 + $0x1a0] ss:$8 sps:$4 sm:$0xff]   ;;  %v3653_v61 = vld [vmem:[%s4327_s10 + $0x1b4] ss:$8 sps:$4 sm:$0xff]   ;;  %v3655_v58 = vld [vmem:[%s4327_s10 + $0xb0] ss:$8 sps:$4 sm:$0xff]  }
 0x28a   : > { %1768 = vmatprep.subr.bf16.mxu0 %v3611_v51  ;;  %v1232_v52 = vld [vmem:[#allocation2 + $0x8] sm:$0xff]  ;;  %v1234_v3 = vld [vmem:[#allocation2 + $0x18] sm:$0xff]  ;;  %v1231_v60 = vld [vmem:[#allocation2] sm:$0xff]  ;;  %s3227_s16 = sshll.u32 %s3226_s18, 8  ;;  %s5197_s19 = sld [smem:[#allocation23_spill]] }
 0x28b   : > { %1679 = vmatprep.mubr.bf16.mxu1 %v1232_v52  ;;  %v3656_v9 = vld [vmem:[%s4327_s10 + $0x1b0] ss:$8 sps:$4 sm:$0xff]   ;;  %v3657_v0 = vld [vmem:[%s4327_s10 + $0xc4] ss:$8 sps:$4 sm:$0xff]   ;;  %1792 = vmatprep.mubr.bf16.mxu0 %v1234_v3  ;;  %v3661_v12 = vld [vmem:[%s4327_s10 + $0xc0] ss:$8 sps:$4 sm:$0xff]  }
 0x28c   : > { %1656 = vmatpush1.bf16.msra.mxu1 %v3613_v62  ;;  %v3659_v6 = vld [vmem:[%s4327_s10 + $0x1c4] ss:$8 sps:$4 sm:$0xff]   ;;  %v3662_v15 = vld [vmem:[%s4327_s10 + $0x1c0] ss:$8 sps:$4 sm:$0xff]   ;;  %v3663_v18 = vld [vmem:[%s4327_s10 + $0xd4] ss:$8 sps:$4 sm:$0xff]  }
 0x28d   : > { %1769 = vmatpush1.bf16.msra.mxu0 %v3614_v4  ;;  %1657 = vmatprep.subr.bf16.mxu1 %v3615_v10  ;;  %v3665_v21 = vld [vmem:[%s4327_s10 + $0x1d4] ss:$8 sps:$4 sm:$0xff]   ;;  %v3667_v41 = vld [vmem:[%s4327_s10 + $0xd0] ss:$8 sps:$4 sm:$0xff]   ;;  %v3669_v22 = vld [vmem:[%s4327_s10 + $0xe4] ss:$8 sps:$4 sm:$0xff]  }
 0x28e   : > { %1770 = vmatprep.subr.bf16.mxu0 %v3617_v16  ;;  %v3668_v56 = vld [vmem:[%s4327_s10 + $0x1d0] ss:$8 sps:$4 sm:$0xff]   ;;  %v3671_v44 = vld [vmem:[%s4327_s10 + $0x1e4] ss:$8 sps:$4 sm:$0xff]   ;;  %v3673_v28 = vld [vmem:[%s4327_s10 + $0xe0] ss:$8 sps:$4 sm:$0xff]  }
 0x28f   : > { %v3674_v45 = vld [vmem:[%s4327_s10 + $0x1e0] ss:$8 sps:$4 sm:$0xff]   ;;  %v3675_v46 = vld [vmem:[%s4327_s10 + $0xf4] ss:$8 sps:$4 sm:$0xff]   ;;  %v3679_v54 = vld [vmem:[%s4327_s10 + $0xf0] ss:$8 sps:$4 sm:$0xff]  }
 0x290   : > { %1658 = vmatpush1.bf16.msra.mxu1 %v3619_v42  ;;  %v3677_v47 = vld [vmem:[%s4327_s10 + $0x1f4] ss:$8 sps:$4 sm:$0xff]   ;;  %v3680_v57 = vld [vmem:[%s4327_s10 + $0x1f0] ss:$8 sps:$4 sm:$0xff]   ;;  %v1236_v2 = vld [vmem:[#allocation2 + $0x28] sm:$0xff]  ;;  %s4996_s15 = sshra.s32 %s3227_s16, 7 }
 0x291   : > { %1771 = vmatpush1.bf16.msra.mxu0 %v3620_v43  ;;  %1659 = vmatprep.subr.bf16.mxu1 %v3621_v23  ;;  %v1233_v63 = vld [vmem:[#allocation2 + $0x10] sm:$0xff]  ;;  %v1238_v5 = vld [vmem:[#allocation2 + $0x38] sm:$0xff]  ;;  %v1235_v8 = vld [vmem:[#allocation2 + $0x20] sm:$0xff]  ;;  %s1877_s12 = scalar_lea.vmem %s5197_s19, %s4996_s15  ;;  %s5198_s10 = sld [smem:[#allocation24_spill]] }
 0x292   : > { %1772 = vmatprep.subr.bf16.mxu0 %v3623_v13  ;;  %v1237_v11 = vld [vmem:[#allocation2 + $0x30] sm:$0xff]  ;;  %v1240_v14 = vld [vmem:[#allocation2 + $0x48] sm:$0xff]  ;;  %v1242_v17 = vld [vmem:[#allocation2 + $0x58] sm:$0xff]  ;;  %s3228_s25 = sshll.u32 %s4996_s15, 3 }
 0x293   : > { %v1239_v20 = vld [vmem:[#allocation2 + $0x40] sm:$0xff]  ;;  %v1241_v49 = vld [vmem:[#allocation2 + $0x50] sm:$0xff]  ;;  %v1244_v53 = vld [vmem:[#allocation2 + $0x68] sm:$0xff]  ;;  %s2194_s8 = scalar_lea.vmem [#allocation3], %s3228_s25 }
 0x294   : > { %1660 = vmatpush1.bf16.msra.mxu1 %v3625_v1  ;;  %v1246_v59 = vld [vmem:[#allocation2 + $0x78] sm:$0xff]  ;;  %v1243_v24 = vld [vmem:[#allocation2 + $0x60] sm:$0xff]  ;;  %v1245_v50 = vld [vmem:[#allocation2 + $0x70] sm:$0xff] }
 0x295   : > { %1773 = vmatpush1.bf16.msra.mxu0 %v3626_v26  ;;  %1661 = vmatprep.subr.bf16.mxu1 %v3627_v7  ;;  %v1248_v27 = vld [vmem:[#allocation2 + $0x88] sm:$0xff]  ;;  %v1250_v51 = vld [vmem:[#allocation2 + $0x98] sm:$0xff]  ;;  %v1247_v62 = vld [vmem:[#allocation2 + $0x80] sm:$0xff] }
 0x296   : > { %1774 = vmatprep.subr.bf16.mxu0 %v3629_v19  ;;  %v1249_v4 = vld [vmem:[#allocation2 + $0x90] sm:$0xff]  ;;  %v1252_v10 = vld [vmem:[#allocation2 + $0xa8] sm:$0xff]  ;;  %v1254_v16 = vld [vmem:[#allocation2 + $0xb8] sm:$0xff] }
 0x297   : > { %v1251_v42 = vld [vmem:[#allocation2 + $0xa0] sm:$0xff]  ;;  %v1253_v43 = vld [vmem:[#allocation2 + $0xb0] sm:$0xff]  ;;  %v1256_v23 = vld [vmem:[#allocation2 + $0xc8] sm:$0xff]  ;;  %s1879_s13 = scalar_lea.vmem %s5198_s10, %s4996_s15 }
 0x298   : > { %1662 = vmatpush1.bf16.msra.mxu1 %v3631_v29  ;;  %v1258_v13 = vld [vmem:[#allocation2 + $0xd8] sm:$0xff]  ;;  %v1255_v1 = vld [vmem:[#allocation2 + $0xc0] sm:$0xff]  ;;  %v1257_v26 = vld [vmem:[#allocation2 + $0xd0] sm:$0xff] }
 0x299   : > { %1775 = vmatpush1.bf16.msra.mxu0 %v3632_v25  ;;  %1663 = vmatprep.subr.bf16.mxu1 %v3633_v30  ;;  %v1260_v7 = vld [vmem:[#allocation2 + $0xe8] sm:$0xff]  ;;  %v1262_v19 = vld [vmem:[#allocation2 + $0xf8] sm:$0xff]  ;;  %v1259_v29 = vld [vmem:[#allocation2 + $0xe0] sm:$0xff] }
 0x29a   : > { %1776 = vmatprep.subr.bf16.mxu0 %v3635_v36  ;;  %v1261_v25 = vld [vmem:[#allocation2 + $0xf0] sm:$0xff] }
 0x29c   : > { %1664 = vmatpush1.bf16.msra.mxu1 %v3637_v31 }
 0x29d   : > { %1777 = vmatpush1.bf16.msra.mxu0 %v3638_v37  ;;  %1665 = vmatprep.subr.bf16.mxu1 %v3639_v32 }
 0x29e   : > { %1778 = vmatprep.subr.bf16.mxu0 %v3641_v38 }
 0x2a0   : > { %1666 = vmatpush1.bf16.msra.mxu1 %v3643_v33 }
 0x2a1   : > { %1779 = vmatpush1.bf16.msra.mxu0 %v3644_v39  ;;  %1667 = vmatprep.subr.bf16.mxu1 %v3645_v34 }
 0x2a2   : > { %1780 = vmatprep.subr.bf16.mxu0 %v3647_v40 }
 0x2a4   : > { %1668 = vmatpush1.bf16.msra.mxu1 %v3649_v35 }
 0x2a5   : > { %1781 = vmatpush1.bf16.msra.mxu0 %v3650_v55  ;;  %1669 = vmatprep.subr.bf16.mxu1 %v3651_v48 }
 0x2a6   : > { %1782 = vmatprep.subr.bf16.mxu0 %v3653_v61 }
 0x2a8   : > { %1670 = vmatpush1.bf16.msra.mxu1 %v3655_v58 }
 0x2a9   : > { %1783 = vmatpush1.bf16.msra.mxu0 %v3656_v9  ;;  %1671 = vmatprep.subr.bf16.mxu1 %v3657_v0 }
 0x2aa   : > { %1784 = vmatprep.subr.bf16.mxu0 %v3659_v6 }
 0x2ac   : > { %1672 = vmatpush1.bf16.msra.mxu1 %v3661_v12 }
 0x2ad   : > { %1785 = vmatpush1.bf16.msra.mxu0 %v3662_v15  ;;  %1673 = vmatprep.subr.bf16.mxu1 %v3663_v18 }
 0x2ae   : > { %1786 = vmatprep.subr.bf16.mxu0 %v3665_v21 }
 0x2b0   : > { %1674 = vmatpush1.bf16.msra.mxu1 %v3667_v41 }
 0x2b1   : > { %1787 = vmatpush1.bf16.msra.mxu0 %v3668_v56  ;;  %1675 = vmatprep.subr.bf16.mxu1 %v3669_v22 }
 0x2b2   : > { %1788 = vmatprep.subr.bf16.mxu0 %v3671_v44 }
 0x2b4   : > { %1676 = vmatpush1.bf16.msra.mxu1 %v3673_v28 }
 0x2b5   : > { %1789 = vmatpush1.bf16.msra.mxu0 %v3674_v45  ;;  %1677 = vmatprep.subr.bf16.mxu1 %v3675_v46 }
 0x2b6   : > { %1790 = vmatprep.subr.bf16.mxu0 %v3677_v47 }
 0x2b8   : > { %1678 = vmatpush1.bf16.msra.mxu1 %v3679_v54 }
 0x2b9   : > { %1791 = vmatpush1.bf16.msra.mxu0 %v3680_v57 }
 0x2bb   : > { %1680 = vmatmul.mubr.bf16.vlgmr.msra.gmra.mrb[0].mxu1 %v1231_v60 }
 0x2bc   : > { %1793 = vmatmul.mubr.bf16.vlgmr.msra.gmra.mrb[0].mxu0 %v1233_v63  ;;  %1689 = vmatprep.mubr.bf16.mxu1 %v1236_v2 }
 0x2bd   : > { %1802 = vmatprep.mubr.bf16.mxu0 %v1238_v5 }
 0x2c3   : > { %1690 = vmatmul.mubr.bf16.gmra.mrb[4].mxu1 %v1235_v8 }
 0x2c4   : > { %1803 = vmatmul.mubr.bf16.gmra.mrb[4].mxu0 %v1237_v11  ;;  %1699 = vmatprep.mubr.bf16.mxu1 %v1240_v14 }
 0x2c5   : > { %1812 = vmatprep.mubr.bf16.mxu0 %v1242_v17 }
 0x2cb   : > { %1700 = vmatmul.mubr.bf16.gmra.mrb[8].mxu1 %v1239_v20 }
 0x2cc   : > { %1813 = vmatmul.mubr.bf16.gmra.mrb[8].mxu0 %v1241_v49  ;;  %1709 = vmatprep.mubr.bf16.mxu1 %v1244_v53 }
 0x2cd   : > { %1822 = vmatprep.mubr.bf16.mxu0 %v1246_v59 }
 0x2d3   : > { %1710 = vmatmul.mubr.bf16.gmra.mrb[12].mxu1 %v1243_v24 }
 0x2d4   : > { %1823 = vmatmul.mubr.bf16.gmra.mrb[12].mxu0 %v1245_v50  ;;  %1719 = vmatprep.mubr.bf16.mxu1 %v1248_v27 }
 0x2d5   : > { %1832 = vmatprep.mubr.bf16.mxu0 %v1250_v51 }
 0x2db   : > { %1720 = vmatmul.mubr.bf16.gmra.mrb[16].mxu1 %v1247_v62 }
 0x2dc   : > { %1833 = vmatmul.mubr.bf16.gmra.mrb[16].mxu0 %v1249_v4  ;;  %1729 = vmatprep.mubr.bf16.mxu1 %v1252_v10 }
 0x2dd   : > { %1842 = vmatprep.mubr.bf16.mxu0 %v1254_v16 }
 0x2e3   : > { %1730 = vmatmul.mubr.bf16.gmra.mrb[20].mxu1 %v1251_v42 }
 0x2e4   : > { %1843 = vmatmul.mubr.bf16.gmra.mrb[20].mxu0 %v1253_v43  ;;  %1739 = vmatprep.mubr.bf16.mxu1 %v1256_v23 }
 0x2e5   : > { %1852 = vmatprep.mubr.bf16.mxu0 %v1258_v13 }
 0x2eb   : > { %1740 = vmatmul.mubr.bf16.gmra.mrb[24].mxu1 %v1255_v1 }
 0x2ec   : > { %1853 = vmatmul.mubr.bf16.gmra.mrb[24].mxu0 %v1257_v26  ;;  %1749 = vmatprep.mubr.bf16.mxu1 %v1260_v7 }
 0x2ed   : > { %1862 = vmatprep.mubr.bf16.mxu0 %v1262_v19 }
 0x2f3   : > { %1750 = vmatmul.mubr.bf16.gmra.mrb[28].mxu1 %v1259_v29 }
 0x2f4   : > { %1863 = vmatmul.mubr.bf16.gmra.mrb[28].mxu0 %v1261_v25 }
 0x38e   : > { %v1681_v30 = vpop.f32.mrb[0].mxu1 }
 0x38f   : > { %v1794_v36 = vpop.f32.mrb[0].mxu0  ;;  %v1683_v37 = vpop.f32.mrb[1].mxu1 }
 0x390   : > { %v4759_v31 = vadd.f32 %v1794_v36, %v1681_v30  ;;  %v1796_v32 = vpop.f32.mrb[1].mxu0  ;;  %v1685_v33 = vpop.f32.mrb[2].mxu1 }
 0x391   : > { %v4761_v38 = vadd.f32 %v1796_v32, %v1683_v37  ;;  %v1798_v39 = vpop.f32.mrb[2].mxu0  ;;  %v1687_v40 = vpop.f32.mrb[3].mxu1 }
 0x392   : > { %v4763_v34 = vadd.f32 %v1798_v39, %v1685_v33  ;;  %v1800_v35 = vpop.f32.mrb[3].mxu0 }
 0x393   : > { %v4765_v55 = vadd.f32 %v1800_v35, %v1687_v40 }
 0x394   : > { %v1881_v48 = vadd.f32 %v4763_v34, %v4759_v31 }
 0x395   : > { %v1902_v61 = vadd.f32 %v4765_v55, %v4761_v38 }
 0x396   : > { %v1691_v52 = vpop.f32.mrb[4].mxu1 }
 0x397   : > { %v1804_v3 = vpop.f32.mrb[4].mxu0  ;;  %v1693_v9 = vpop.f32.mrb[5].mxu1 }
 0x398   : > { %v4771_v58 = vadd.f32 %v1804_v3, %v1691_v52  ;;  %v1806_v0 = vpop.f32.mrb[5].mxu0  ;;  %v1695_v12 = vpop.f32.mrb[6].mxu1 }
 0x399   : > { %v4773_v6 = vadd.f32 %v1806_v0, %v1693_v9  ;;  %v1808_v15 = vpop.f32.mrb[6].mxu0  ;;  %v1697_v41 = vpop.f32.mrb[7].mxu1 }
 0x39a   : > { %v1882_v18 = vadd.f32 %v1881_v48, %v4771_v58  ;;  %v4776_v21 = vadd.f32 %v1808_v15, %v1695_v12  ;;  %v1810_v56 = vpop.f32.mrb[7].mxu0 }
 0x39b   : > { %v1903_v22 = vadd.f32 %v1902_v61, %v4773_v6  ;;  %v4779_v44 = vadd.f32 %v1810_v56, %v1697_v41 }
 0x39c   : > { %v1883_v28 = vadd.f32 %v1882_v18, %v4776_v21 }
 0x39d   : > { %v1904_v45 = vadd.f32 %v1903_v22, %v4779_v44 }
 0x39e   : > { %v1701_v46 = vpop.f32.mrb[8].mxu1 }
 0x39f   : > { %v1814_v47 = vpop.f32.mrb[8].mxu0  ;;  %v1703_v57 = vpop.f32.mrb[9].mxu1 }
 0x3a0   : > { %v4783_v54 = vadd.f32 %v1814_v47, %v1701_v46  ;;  %v1816_v60 = vpop.f32.mrb[9].mxu0  ;;  %v1705_v2 = vpop.f32.mrb[10].mxu1 }
 0x3a1   : > { %v4785_v63 = vadd.f32 %v1816_v60, %v1703_v57  ;;  %v1818_v5 = vpop.f32.mrb[10].mxu0  ;;  %v1707_v14 = vpop.f32.mrb[11].mxu1 }
 0x3a2   : > { %v1884_v8 = vadd.f32 %v1883_v28, %v4783_v54  ;;  %v4788_v11 = vadd.f32 %v1818_v5, %v1705_v2  ;;  %v1820_v17 = vpop.f32.mrb[11].mxu0 }
 0x3a3   : > { %v1905_v20 = vadd.f32 %v1904_v45, %v4785_v63  ;;  %v4791_v49 = vadd.f32 %v1820_v17, %v1707_v14 }
 0x3a4   : > { %v1885_v53 = vadd.f32 %v1884_v8, %v4788_v11 }
 0x3a5   : > { %v1906_v59 = vadd.f32 %v1905_v20, %v4791_v49 }
 0x3a6   : > { %v1711_v24 = vpop.f32.mrb[12].mxu1 }
 0x3a7   : > { %v1824_v50 = vpop.f32.mrb[12].mxu0  ;;  %v1713_v51 = vpop.f32.mrb[13].mxu1 }
 0x3a8   : > { %v4795_v27 = vadd.f32 %v1824_v50, %v1711_v24  ;;  %v1826_v62 = vpop.f32.mrb[13].mxu0  ;;  %v1715_v10 = vpop.f32.mrb[14].mxu1 }
 0x3a9   : > { %v4797_v4 = vadd.f32 %v1826_v62, %v1713_v51  ;;  %v1828_v16 = vpop.f32.mrb[14].mxu0  ;;  %v1717_v23 = vpop.f32.mrb[15].mxu1 }
 0x3aa   : > { %v1886_v42 = vadd.f32 %v1885_v53, %v4795_v27  ;;  %v4800_v43 = vadd.f32 %v1828_v16, %v1715_v10  ;;  %v1830_v13 = vpop.f32.mrb[15].mxu0 }
 0x3ab   : > { %v1907_v1 = vadd.f32 %v1906_v59, %v4797_v4  ;;  %v4803_v26 = vadd.f32 %v1830_v13, %v1717_v23 }
 0x3ac   : > { %v1887_v7 = vadd.f32 %v1886_v42, %v4800_v43 }
 0x3ad   : > { %v1908_v19 = vadd.f32 %v1907_v1, %v4803_v26 }
 0x3ae   : > { %v1721_v29 = vpop.f32.mrb[16].mxu1 }
 0x3af   : > { %v1834_v25 = vpop.f32.mrb[16].mxu0  ;;  %v1723_v36 = vpop.f32.mrb[17].mxu1 }
 0x3b0   : > { %v4807_v30 = vadd.f32 %v1834_v25, %v1721_v29  ;;  %v1836_v37 = vpop.f32.mrb[17].mxu0  ;;  %v1725_v33 = vpop.f32.mrb[18].mxu1 }
 0x3b1   : > { %v4809_v32 = vadd.f32 %v1836_v37, %v1723_v36  ;;  %v1838_v39 = vpop.f32.mrb[18].mxu0  ;;  %v1727_v48 = vpop.f32.mrb[19].mxu1 }
 0x3b2   : > { %v1888_v40 = vadd.f32 %v1887_v7, %v4807_v30  ;;  %v4812_v35 = vadd.f32 %v1838_v39, %v1725_v33  ;;  %v1840_v61 = vpop.f32.mrb[19].mxu0 }
 0x3b3   : > { %v1909_v52 = vadd.f32 %v1908_v19, %v4809_v32  ;;  %v4815_v3 = vadd.f32 %v1840_v61, %v1727_v48 }
 0x3b4   : > { %v1889_v9 = vadd.f32 %v1888_v40, %v4812_v35 }
 0x3b5   : > { %v1910_v0 = vadd.f32 %v1909_v52, %v4815_v3 }
 0x3b6   : > { %v1731_v12 = vpop.f32.mrb[20].mxu1 }
 0x3b7   : > { %v1844_v15 = vpop.f32.mrb[20].mxu0  ;;  %v1733_v41 = vpop.f32.mrb[21].mxu1 }
 0x3b8   : > { %v4819_v18 = vadd.f32 %v1844_v15, %v1731_v12  ;;  %v1846_v56 = vpop.f32.mrb[21].mxu0  ;;  %v1735_v28 = vpop.f32.mrb[22].mxu1 }
 0x3b9   : > { %v4821_v22 = vadd.f32 %v1846_v56, %v1733_v41  ;;  %v1848_v45 = vpop.f32.mrb[22].mxu0  ;;  %v1737_v57 = vpop.f32.mrb[23].mxu1 }
 0x3ba   : > { %v1890_v46 = vadd.f32 %v1889_v9, %v4819_v18  ;;  %v4824_v47 = vadd.f32 %v1848_v45, %v1735_v28  ;;  %v1850_v60 = vpop.f32.mrb[23].mxu0 }
 0x3bb   : > { %v1911_v2 = vadd.f32 %v1910_v0, %v4821_v22  ;;  %v4827_v5 = vadd.f32 %v1850_v60, %v1737_v57 }
 0x3bc   : > { %v1891_v8 = vadd.f32 %v1890_v46, %v4824_v47 }
 0x3bd   : > { %v1912_v14 = vadd.f32 %v1911_v2, %v4827_v5 }
 0x3be   : > { %v1741_v17 = vpop.f32.mrb[24].mxu1 }
 0x3bf   : > { %v1854_v20 = vpop.f32.mrb[24].mxu0  ;;  %v1743_v59 = vpop.f32.mrb[25].mxu1 }
 0x3c0   : > { %v1855_v53 = vadd.f32 %v1854_v20, %v1741_v17  ;;  %v1856_v24 = vpop.f32.mrb[25].mxu0  ;;  %v1745_v51 = vpop.f32.mrb[26].mxu1 }
 0x3c1   : > { %v4831_v50 = vadd.f32 %v1856_v24, %v1743_v59  ;;  %v1858_v62 = vpop.f32.mrb[26].mxu0  ;;  %v1747_v42 = vpop.f32.mrb[27].mxu1 }
 0x3c2   : > { %v1892_v10 = vadd.f32 %v1891_v8, %v1855_v53  ;;  %v1859_v16 = vadd.f32 %v1858_v62, %v1745_v51  ;;  %v1860_v23 = vpop.f32.mrb[27].mxu0 }
 0x3c3   : > { %v1913_v13 = vadd.f32 %v1912_v14, %v4831_v50  ;;  %v4834_v1 = vadd.f32 %v1860_v23, %v1747_v42 }
 0x3c4   : > { %v1893_v7 = vadd.f32 %v1892_v10, %v1859_v16 }
 0x3c5   : > { %v1914_v19 = vadd.f32 %v1913_v13, %v4834_v1 }
 0x3c6   : > { %v1751_v29 = vpop.f32.mrb[28].mxu1 }
 0x3c7   : > { %v1864_v25 = vpop.f32.mrb[28].mxu0  ;;  %v1753_v37 = vpop.f32.mrb[29].mxu1 }
 0x3c8   : > { %v1865_v36 = vadd.f32 %v1864_v25, %v1751_v29  ;;  %v1866_v33 = vpop.f32.mrb[29].mxu0  ;;  %v1755_v40 = vpop.f32.mrb[30].mxu1 }
 0x3c9   : > { %v4837_v39 = vadd.f32 %v1866_v33, %v1753_v37  ;;  %v1868_v48 = vpop.f32.mrb[30].mxu0  ;;  %v1757_v9 = vpop.f32.mrb[31].mxu1 }
 0x3ca   : > { %v1894_v61 = vadd.f32 %v1893_v7, %v1865_v36  ;;  %v1869_v52 = vadd.f32 %v1868_v48, %v1755_v40  ;;  %v1870_v0 = vpop.f32.mrb[31].mxu0 }
 0x3cb   : > { %v1915_v12 = vadd.f32 %v1914_v19, %v4837_v39  ;;  %v1871_v15 = vadd.f32 %v1870_v0, %v1757_v9 }
 0x3cc   : > { %v1895_v41 = vadd.f32 %v1894_v61, %v1869_v52 }
 0x3cd   : > { %v1916_v56 = vadd.f32 %v1915_v12, %v1871_v15 }
 0x3ce   : > { %v1896_v28 = vrot.slane %v1895_v41, 4 }
 0x3cf   : > { %v1917_v45 = vrot.slane %v1916_v56, 4 }
 0x3d0   : > { %v1897_v46 = vadd.f32 %v1896_v28, %v1895_v41 }
 0x3d1   : > { %v1918_v57 = vadd.f32 %v1917_v45, %v1916_v56 }
 0x3d2   : > { %v1898_v60 = vrot.slane %v1897_v46, 2 }
 0x3d3   : > { %v1919_v2 = vrot.slane %v1918_v57, 2 }
 0x3d4   : > { %v1899_v8 = vadd.f32 %v1898_v60, %v1897_v46 }
 0x3d5   : > { %v1920_v14 = vadd.f32 %v1919_v2, %v1918_v57 }
 0x3d6   : > { %v1900_v17 = vrot.slane %v1899_v8, 1 }
 0x3d7   : > { %v1921_v20 = vrot.slane %v1920_v14, 1 }
 0x3d8   : > { %v1901_v59 = vadd.f32 %v1900_v17, %v1899_v8 }
 0x3d9   : > { %v1922_v51 = vadd.f32 %v1921_v20, %v1920_v14 }
 0x3da   : > { %v1924_v24 = vmul.f32 0.0078125, %v1901_v59 }
 0x3db   : > { %v1925_v25 = vmul.f32 0.0078125, %v1922_v51 }
 0x3dc   : > { %v4841_v62 = vsub.f32 %v4759_v31, %v1924_v24  ;;  %v4844_v10 = vsub.f32 %v4763_v34, %v1924_v24  ;;  %v4847_v42 = vsub.f32 %v4771_v58, %v1924_v24  ;;  %v4850_v23 = vsub.f32 %v4776_v21, %v1924_v24 }
 0x3dd   : > { %v4853_v13 = vsub.f32 %v4783_v54, %v1924_v24  ;;  %v4856_v7 = vsub.f32 %v4788_v11, %v1924_v24  ;;  %v4859_v19 = vsub.f32 %v4795_v27, %v1924_v24  ;;  %v4862_v31 = vsub.f32 %v4800_v43, %v1924_v24 }
 0x3de   : > { %v4865_v34 = vsub.f32 %v4807_v30, %v1924_v24  ;;  %v4868_v58 = vsub.f32 %v4812_v35, %v1924_v24  ;;  %v4871_v21 = vsub.f32 %v4819_v18, %v1924_v24  ;;  %v4874_v54 = vsub.f32 %v4824_v47, %v1924_v24 }
 0x3df   : > { %v4876_v11 = vsub.f32 %v1855_v53, %v1924_v24  ;;  %v4878_v29 = vsub.f32 %v1859_v16, %v1924_v24  ;;  %v4880_v27 = vsub.f32 %v1865_v36, %v1924_v24  ;;  %v4882_v43 = vsub.f32 %v1869_v52, %v1924_v24 }
 0x3e0   : > { %v1958_v30 = vmul.f32 %v4841_v62, %v4841_v62  ;;  %v1960_v35 = vmul.f32 %v4844_v10, %v4844_v10  ;;  %v1962_v18 = vmul.f32 %v4847_v42, %v4847_v42  ;;  %v1964_v47 = vmul.f32 %v4850_v23, %v4850_v23 }
 0x3e1   : > { %v4893_v16 = vsub.f32 %v4761_v38, %v1925_v25  ;;  %v4896_v36 = vsub.f32 %v4765_v55, %v1925_v25  ;;  %v4899_v37 = vsub.f32 %v4773_v6, %v1925_v25  ;;  %v4902_v33 = vsub.f32 %v4779_v44, %v1925_v25 }
 0x3e2   : > { %v1990_v53 = vadd.f32 %v1960_v35, %v1958_v30  ;;  %v4905_v40 = vsub.f32 %v4785_v63, %v1925_v25  ;;  %v4908_v48 = vsub.f32 %v4791_v49, %v1925_v25  ;;  %v4911_v61 = vsub.f32 %v4797_v4, %v1925_v25 }
 0x3e3   : > { %v4914_v52 = vsub.f32 %v4803_v26, %v1925_v25  ;;  %v4917_v55 = vsub.f32 %v4809_v32, %v1925_v25  ;;  %v4920_v6 = vsub.f32 %v4815_v3, %v1925_v25  ;;  %v4923_v44 = vsub.f32 %v4821_v22, %v1925_v25 }
 0x3e4   : > { %v1991_v38 = vadd.f32 %v1990_v53, %v1962_v18  ;;  %v4926_v63 = vsub.f32 %v4827_v5, %v1925_v25  ;;  %v4929_v49 = vsub.f32 %v4831_v50, %v1925_v25  ;;  %v4932_v4 = vsub.f32 %v4834_v1, %v1925_v25 }
 0x3e5   : > { %v1966_v26 = vmul.f32 %v4853_v13, %v4853_v13  ;;  %v4937_v9 = vsub.f32 %v4837_v39, %v1925_v25  ;;  %v4939_v3 = vsub.f32 %v1871_v15, %v1925_v25  ;;  %v1959_v22 = vmul.f32 %v4893_v16, %v4893_v16 }
 0x3e6   : > { %v1992_v32 = vadd.f32 %v1991_v38, %v1964_v47  ;;  %v1961_v5 = vmul.f32 %v4896_v36, %v4896_v36  ;;  %v1968_v50 = vmul.f32 %v4856_v7, %v4856_v7  ;;  %v1970_v0 = vmul.f32 %v4859_v19, %v4859_v19 }
 0x3e7   : > { %v1963_v39 = vmul.f32 %v4899_v37, %v4899_v37  ;;  %v1972_v15 = vmul.f32 %v4862_v31, %v4862_v31  ;;  %v1965_v28 = vmul.f32 %v4902_v33, %v4902_v33  ;;  %v1974_v46 = vmul.f32 %v4865_v34, %v4865_v34 }
 0x3e8   : > { %v1993_v1 = vadd.f32 %v1992_v32, %v1966_v26  ;;  %v2011_v41 = vadd.f32 %v1961_v5, %v1959_v22  ;;  %v1967_v60 = vmul.f32 %v4905_v40, %v4905_v40  ;;  %v1976_v8 = vmul.f32 %v4868_v58, %v4868_v58 }
 0x3e9   : > { %v1969_v17 = vmul.f32 %v4908_v48, %v4908_v48  ;;  %v1978_v59 = vmul.f32 %v4871_v21, %v4871_v21  ;;  %v1971_v51 = vmul.f32 %v4911_v61, %v4911_v61  ;;  %v1980_v35 = vmul.f32 %v4874_v54, %v4874_v54 }
 0x3ea   : > { %v1994_v12 = vadd.f32 %v1993_v1, %v1968_v50  ;;  %v2012_v45 = vadd.f32 %v2011_v41, %v1963_v39  ;;  %v1973_v18 = vmul.f32 %v4914_v52, %v4914_v52  ;;  %v1982_v53 = vmul.f32 %v4876_v11, %v4876_v11 }
 0x3eb   : > { %v1975_v26 = vmul.f32 %v4917_v55, %v4917_v55  ;;  %v1984_v22 = vmul.f32 %v4878_v29, %v4878_v29  ;;  %v1977_v50 = vmul.f32 %v4920_v6, %v4920_v6  ;;  %v1979_v39 = vmul.f32 %v4923_v44, %v4923_v44 }
 0x3ec   : > { %v1995_v56 = vadd.f32 %v1994_v12, %v1970_v0  ;;  %v2013_v2 = vadd.f32 %v2012_v45, %v1965_v28  ;;  %v1986_v0 = vmul.f32 %v4880_v27, %v4880_v27  ;;  %v1981_v28 = vmul.f32 %v4926_v63, %v4926_v63 }
 0x3ee   : > { %v1996_v57 = vadd.f32 %v1995_v56, %v1972_v15  ;;  %v2014_v20 = vadd.f32 %v2013_v2, %v1967_v60  ;;  %v1988_v15 = vmul.f32 %v4882_v43, %v4882_v43 }
 0x3f0   : > { %v1997_v14 = vadd.f32 %v1996_v57, %v1974_v46  ;;  %v2015_v30 = vadd.f32 %v2014_v20, %v1969_v17  ;;  %v1983_v57 = vmul.f32 %v4929_v49, %v4929_v49  ;;  %v1987_v20 = vmul.f32 %v4937_v9, %v4937_v9 }
 0x3f2   : > { %v1998_v24 = vadd.f32 %v1997_v14, %v1976_v8  ;;  %v2016_v47 = vadd.f32 %v2015_v30, %v1971_v51  ;;  %v1985_v8 = vmul.f32 %v4932_v4, %v4932_v4  ;;  %v1989_v51 = vmul.f32 %v4939_v3, %v4939_v3 }
 0x3f4   : > { %v1999_v25 = vadd.f32 %v1998_v24, %v1978_v59  ;;  %v2017_v32 = vadd.f32 %v2016_v47, %v1973_v18 }
 0x3f6   : > { %v2000_v38 = vadd.f32 %v1999_v25, %v1980_v35  ;;  %v2018_v1 = vadd.f32 %v2017_v32, %v1975_v26 }
 0x3f8   : > { %v2001_v5 = vadd.f32 %v2000_v38, %v1982_v53  ;;  %v2019_v41 = vadd.f32 %v2018_v1, %v1977_v50 }
 0x3fa   : > { %v2002_v12 = vadd.f32 %v2001_v5, %v1984_v22  ;;  %v2020_v45 = vadd.f32 %v2019_v41, %v1979_v39 }
 0x3fc   : > { %v2003_v56 = vadd.f32 %v2002_v12, %v1986_v0  ;;  %v2021_v60 = vadd.f32 %v2020_v45, %v1981_v28  ;;  %v2046_v28 = vlaneseq }
 0x3fe   : > { %v2004_v46 = vadd.f32 %v2003_v56, %v1988_v15  ;;  %v2022_v14 = vadd.f32 %v2021_v60, %v1983_v57  ;;  %v4007_v15 = vmov 1966171168  }
 0x3ff   : > { %v2044_v56 = vunpack.c.l.s4 %v4007_v15 }
 0x400   : > { %v2005_v2 = vrot.slane %v2004_v46, 4  ;;  %v2023_v59 = vadd.f32 %v2022_v14, %v1985_v8 }
 0x401   : > { %v2045_v45 = vunpack.c.0.s8 %v2044_v56 }
 0x402   : > { %v2006_v17 = vadd.f32 %v2005_v2, %v2004_v46  ;;  %v2024_v30 = vadd.f32 %v2023_v59, %v1987_v20  ;;  %v2047_v46 = vshrl.u32 %v2046_v28, 7 }
 0x404   : > { %v2007_v24 = vrot.slane %v2006_v17, 2  ;;  %v2025_v25 = vadd.f32 %v2024_v30, %v1989_v51  ;;  %v2048_v60 = vsub.s32 %v2045_v45, %v2047_v46  ;;  %v2062_v59 = vsub.s32 0, %v2047_v46  ;;  %v1880_v51 = vld [vmem:[%s1879_s13] sm:$0x3] }
 0x406   : > { %v2008_v35 = vadd.f32 %v2007_v24, %v2006_v17  ;;  %v2026_v47 = vrot.slane %v2025_v25, 4  ;;  %v1878_v17 = vld [vmem:[%s1877_s12] sm:$0x3]  ;;  %v2066_v24 = vsub.s32 1, %v2047_v46 }
 0x408   : > { %v2009_v18 = vrot.slane %v2008_v35, 1  ;;  %v2027_v38 = vadd.f32 %v2026_v47, %v2025_v25  ;;  %v5008_v47 = vrot.slane %v1880_v51, %v2066_v24 }
 0x40a   : > { %v2010_v53 = vadd.f32 %v2009_v18, %v2008_v35  ;;  %v2028_v32 = vrot.slane %v2027_v38, 2  ;;  %v5006_v18 = vrot.slane %v1880_v51, %v2062_v59 }
 0x40c   : > { %v2032_v26 = vmul.f32 0.0078125, %v2010_v53  ;;  %v2029_v22 = vadd.f32 %v2028_v32, %v2027_v38 }
 0x40e   : > { %v2034_v5 = vmax.f32 %v2032_v26, 0.0  ;;  %v2030_v50 = vrot.slane %v2029_v22, 1 }
 0x410   : > { %v2031_v1 = vadd.f32 %v2030_v50, %v2029_v22  ;;  %v2036_v0 = vadd.f32 1e-05, %v2034_v5 }
 0x412   : > { %v2033_v12 = vmul.f32 0.0078125, %v2031_v1  ;;  %3681 = vrsqrt.f32 %v2036_v0 }
 0x414   : > { %v2035_v39 = vmax.f32 %v2033_v12, 0.0 }
 0x416   : > { %v2037_v41 = vadd.f32 1e-05, %v2035_v39 }
 0x418   : > { %3683 = vrsqrt.f32 %v2037_v41 }
 0x41c   : > { %v3682_v57 = vpop.eup %3681 }
 0x422   : > { %v3684_v2 = vpop.eup %3683 }
 0x423   : > { %v2042_v8 = vcombine.low %v3682_v57, %v3684_v2 }
 0x425   : > { %v2049_v14 = vrot.slane %v2042_v8, %v2048_v60 }
 0x427   : > { %v2056_v20 = vrot.slane %v2049_v14, %v2048_v60 }
 0x429   : > { %v2058_v30 = vmul.f32 %v2056_v20, %v1878_v17 }
 0x42b   : > { %v2063_v35 = vrot.slane %v2058_v30, %v2062_v59  ;;  %v2067_v25 = vrot.slane %v2058_v30, %v2066_v24 }
 0x42d   : > { %v2070_v53 = vmul.f32 %v2063_v35, %v4841_v62  ;;  %v2071_v38 = vmul.f32 %v2067_v25, %v4893_v16  ;;  %v2072_v26 = vmul.f32 %v2063_v35, %v4844_v10  ;;  %v2073_v32 = vmul.f32 %v2067_v25, %v4896_v36 }
 0x42e   : > { %v2074_v22 = vmul.f32 %v2063_v35, %v4847_v42  ;;  %v2075_v5 = vmul.f32 %v2067_v25, %v4899_v37  ;;  %v2076_v50 = vmul.f32 %v2063_v35, %v4850_v23  ;;  %v2077_v1 = vmul.f32 %v2067_v25, %v4902_v33 }
 0x42f   : > { %v2078_v0 = vmul.f32 %v2063_v35, %v4853_v13  ;;  %v2079_v12 = vmul.f32 %v2067_v25, %v4905_v40  ;;  %v2080_v62 = vmul.f32 %v2063_v35, %v4856_v7  ;;  %v2081_v16 = vmul.f32 %v2067_v25, %v4908_v48 }
 0x430   : > { %v2082_v10 = vmul.f32 %v2063_v35, %v4859_v19  ;;  %v2083_v36 = vmul.f32 %v2067_v25, %v4911_v61  ;;  %v2084_v42 = vmul.f32 %v2063_v35, %v4862_v31  ;;  %v2085_v37 = vmul.f32 %v2067_v25, %v4914_v52 }
 0x431   : > { %v2086_v23 = vmul.f32 %v2063_v35, %v4865_v34  ;;  %v2087_v33 = vmul.f32 %v2067_v25, %v4917_v55  ;;  %v2088_v13 = vmul.f32 %v2063_v35, %v4868_v58  ;;  %v2089_v40 = vmul.f32 %v2067_v25, %v4920_v6 }
 0x432   : > { %v2090_v7 = vmul.f32 %v2063_v35, %v4871_v21  ;;  %v2091_v48 = vmul.f32 %v2067_v25, %v4923_v44  ;;  %v2092_v19 = vmul.f32 %v2063_v35, %v4874_v54  ;;  %v2093_v61 = vmul.f32 %v2067_v25, %v4926_v63 }
 0x433   : > { %v2094_v31 = vmul.f32 %v2063_v35, %v4876_v11  ;;  %v2095_v52 = vmul.f32 %v2067_v25, %v4929_v49  ;;  %v2096_v34 = vmul.f32 %v2063_v35, %v4878_v29  ;;  %v2097_v55 = vmul.f32 %v2067_v25, %v4932_v4 }
 0x434   : > { %v2098_v58 = vmul.f32 %v2063_v35, %v4880_v27  ;;  %v2099_v6 = vmul.f32 %v2067_v25, %v4937_v9  ;;  %v2100_v21 = vmul.f32 %v2063_v35, %v4882_v43  ;;  %v2101_v44 = vmul.f32 %v2067_v25, %v4939_v3 }
 0x435   : > { %v5043_v54 = vadd.f32 %v5006_v18, %v2070_v53  ;;  %v5046_v63 = vadd.f32 %v5008_v47, %v2071_v38  ;;  %v5049_v11 = vadd.f32 %v5006_v18, %v2072_v26  ;;  %v5052_v29 = vadd.f32 %v5008_v47, %v2073_v32 }
 0x436   : > { %v5055_v27 = vadd.f32 %v5006_v18, %v2074_v22  ;;  %v5058_v49 = vadd.f32 %v5008_v47, %v2075_v5  ;;  %v2119_v43 = vadd.f32 %v5006_v18, %v2076_v50  ;;  %v2120_v4 = vadd.f32 %v5008_v47, %v2077_v1 }
 0x437   : > { %v2121_v9 = vadd.f32 %v5006_v18, %v2078_v0  ;;  %v2122_v3 = vadd.f32 %v5008_v47, %v2079_v12  ;;  %v2123_v39 = vadd.f32 %v5006_v18, %v2080_v62  ;;  %v2124_v41 = vadd.f32 %v5008_v47, %v2081_v16 }
 0x438   : > { %v2125_v15 = vadd.f32 %v5006_v18, %v2082_v10  ;;  %v2126_v56 = vadd.f32 %v5008_v47, %v2083_v36  ;;  %v2127_v28 = vadd.f32 %v5006_v18, %v2084_v42  ;;  %v2128_v45 = vadd.f32 %v5008_v47, %v2085_v37 }
 0x439   : > { %v2129_v46 = vadd.f32 %v5006_v18, %v2086_v23  ;;  %v2130_v57 = vadd.f32 %v5008_v47, %v2087_v33  ;;  %v2131_v60 = vadd.f32 %v5006_v18, %v2088_v13  ;;  %v2132_v2 = vadd.f32 %v5008_v47, %v2089_v40 }
 0x43a   : > { %v2133_v8 = vadd.f32 %v5006_v18, %v2090_v7  ;;  %v2134_v14 = vadd.f32 %v5008_v47, %v2091_v48  ;;  %v2135_v17 = vadd.f32 %v5006_v18, %v2092_v19  ;;  %v2136_v20 = vadd.f32 %v5008_v47, %v2093_v61 }
 0x43b   : > { %v2137_v59 = vadd.f32 %v5006_v18, %v2094_v31  ;;  %v2138_v24 = vadd.f32 %v5008_v47, %v2095_v52  ;;  %v2139_v51 = vadd.f32 %v5006_v18, %v2096_v34  ;;  %v2140_v30 = vadd.f32 %v5008_v47, %v2097_v55 }
 0x43c   : > { %v2141_v35 = vadd.f32 %v5006_v18, %v2098_v58  ;;  %v2142_v25 = vadd.f32 %v5008_v47, %v2099_v6  ;;  %v2143_v53 = vadd.f32 %v5006_v18, %v2100_v21  ;;  %v2144_v38 = vadd.f32 %v5008_v47, %v2101_v44 }
 0x43d   : > { %v2145_v26 = vmax.f32 %v5043_v54, 0.0  ;;  %v2146_v32 = vmax.f32 %v5046_v63, 0.0  ;;  %v2147_v22 = vmax.f32 %v5049_v11, 0.0  ;;  %v2148_v5 = vmax.f32 %v5052_v29, 0.0 }
 0x43e   : > { %v2149_v50 = vmax.f32 %v5055_v27, 0.0  ;;  %v2150_v1 = vmax.f32 %v5058_v49, 0.0  ;;  %v2151_v0 = vmax.f32 %v2119_v43, 0.0  ;;  %v2152_v12 = vmax.f32 %v2120_v4, 0.0 }
 0x43f   : > { %v2153_v62 = vmax.f32 %v2121_v9, 0.0  ;;  %v2154_v16 = vmax.f32 %v2122_v3, 0.0  ;;  %v2155_v18 = vmax.f32 %v2123_v39, 0.0  ;;  %v2156_v10 = vmax.f32 %v2124_v41, 0.0 }
 0x440   : > { %v2157_v47 = vmax.f32 %v2125_v15, 0.0  ;;  %v2158_v36 = vmax.f32 %v2126_v56, 0.0  ;;  %v2159_v42 = vmax.f32 %v2127_v28, 0.0  ;;  %v2160_v37 = vmax.f32 %v2128_v45, 0.0 }
 0x441   : > { %v2161_v23 = vmax.f32 %v2129_v46, 0.0  ;;  %v2162_v33 = vmax.f32 %v2130_v57, 0.0  ;;  %v2163_v13 = vmax.f32 %v2131_v60, 0.0  ;;  %v2164_v40 = vmax.f32 %v2132_v2, 0.0 }
 0x442   : > { %v2165_v7 = vmax.f32 %v2133_v8, 0.0  ;;  %v2166_v48 = vmax.f32 %v2134_v14, 0.0  ;;  %v2167_v19 = vmax.f32 %v2135_v17, 0.0  ;;  %v2168_v61 = vmax.f32 %v2136_v20, 0.0 }
 0x443   : > { %v2169_v31 = vmax.f32 %v2137_v59, 0.0  ;;  %v2170_v52 = vmax.f32 %v2138_v24, 0.0  ;;  %v2171_v34 = vmax.f32 %v2139_v51, 0.0  ;;  %v2172_v55 = vmax.f32 %v2140_v30, 0.0 }
 0x444   : > { %v2173_v58 = vmax.f32 %v2141_v35, 0.0  ;;  %v2174_v6 = vmax.f32 %v2142_v25, 0.0  ;;  %v2175_v21 = vmax.f32 %v2143_v53, 0.0  ;;  %v2176_v44 = vmax.f32 %v2144_v38, 0.0 }
 0x445   : > { %v2177_v54 = vpack.c.bf16 %v2147_v22, %v2145_v26  ;;  %v2178_v63 = vpack.c.bf16 %v2148_v5, %v2146_v32  ;;  %v2179_v11 = vpack.c.bf16 %v2151_v0, %v2149_v50  ;;  %v2180_v29 = vpack.c.bf16 %v2152_v12, %v2150_v1 }
 0x446   : > { %v2181_v27 = vpack.c.bf16 %v2155_v18, %v2153_v62  ;;  %v2182_v49 = vpack.c.bf16 %v2156_v10, %v2154_v16  ;;  %v2183_v43 = vpack.c.bf16 %v2159_v42, %v2157_v47  ;;  %v2184_v4 = vpack.c.bf16 %v2160_v37, %v2158_v36 }
 0x447   : > { %v2185_v9 = vpack.c.bf16 %v2163_v13, %v2161_v23  ;;  %v2186_v3 = vpack.c.bf16 %v2164_v40, %v2162_v33  ;;  %v2187_v39 = vpack.c.bf16 %v2167_v19, %v2165_v7  ;;  %v2188_v41 = vpack.c.bf16 %v2168_v61, %v2166_v48  ;;  %2195 = vst [vmem:[%s2194_s8] sm:$0xff] %v2177_v54 }
 0x448   : > { %2196 = vst [vmem:[%s2194_s8 + $0x8] sm:$0xff] %v2178_v63  ;;  %2197 = vst [vmem:[%s2194_s8 + $0x20] sm:$0xff] %v2179_v11  ;;  %v2189_v15 = vpack.c.bf16 %v2171_v34, %v2169_v31  ;;  %v2190_v56 = vpack.c.bf16 %v2172_v55, %v2170_v52  ;;  %v2191_v28 = vpack.c.bf16 %v2175_v21, %v2173_v58 }
 0x449   : > { %2198 = vst [vmem:[%s2194_s8 + $0x28] sm:$0xff] %v2180_v29  ;;  %v2192_v45 = vpack.c.bf16 %v2176_v44, %v2174_v6  ;;  %2199 = vst [vmem:[%s2194_s8 + $0x40] sm:$0xff] %v2181_v27 }
 0x44a   : > { %2200 = vst [vmem:[%s2194_s8 + $0x48] sm:$0xff] %v2182_v49  ;;  %2201 = vst [vmem:[%s2194_s8 + $0x60] sm:$0xff] %v2183_v43 }
 0x44b   : > { %2202 = vst [vmem:[%s2194_s8 + $0x68] sm:$0xff] %v2184_v4  ;;  %2203 = vst [vmem:[%s2194_s8 + $0x80] sm:$0xff] %v2185_v9 }
 0x44c   : > { %2204 = vst [vmem:[%s2194_s8 + $0x88] sm:$0xff] %v2186_v3  ;;  %2205 = vst [vmem:[%s2194_s8 + $0xa0] sm:$0xff] %v2187_v39 }
 0x44d   : > { %2206 = vst [vmem:[%s2194_s8 + $0xa8] sm:$0xff] %v2188_v41  ;;  %2207 = vst [vmem:[%s2194_s8 + $0xc0] sm:$0xff] %v2189_v15 }
 0x44e   : > { %2208 = vst [vmem:[%s2194_s8 + $0xc8] sm:$0xff] %v2190_v56  ;;  %2209 = vst [vmem:[%s2194_s8 + $0xe0] sm:$0xff] %v2191_v28 }
 0x44f   : > { %2210 = vst [vmem:[%s2194_s8 + $0xe8] sm:$0xff] %v2192_v45 }
 0x450 PF: > { %2214 = sbr.rel (%p1226_p9) target bundleno = 1444 (0x5a4), region = 80  ;;  %v3685_v46 = vld [vmem:[#allocation10 + $0x4] ss:$8 sps:$4 sm:$0xff] (!%p1226_p9)   ;;  %v3689_v60 = vld [vmem:[#allocation10] ss:$8 sps:$4 sm:$0xff] (!%p1226_p9)  }
 0x451   : > { %v3687_v57 = vld [vmem:[#allocation10 + $0x104] ss:$8 sps:$4 sm:$0xff] (!%p1226_p9)   ;;  %2631 = vmatprep.subr.bf16.mxu1 (!%p1226_p9), %v3685_v46  ;;  %v3690_v2 = vld [vmem:[#allocation10 + $0x100] ss:$8 sps:$4 sm:$0xff] (!%p1226_p9)   ;;  %v3691_v8 = vld [vmem:[#allocation10 + $0x14] ss:$8 sps:$4 sm:$0xff] (!%p1226_p9)  }
 0x452   : > { %2744 = vmatprep.subr.bf16.mxu0 (!%p1226_p9), %v3687_v57  ;;  %2632 = vmatpush1.bf16.msra.mxu1 (!%p1226_p9), %v3689_v60  ;;  %v3693_v14 = vld [vmem:[#allocation10 + $0x114] ss:$8 sps:$4 sm:$0xff] (!%p1226_p9)   ;;  %v3695_v17 = vld [vmem:[#allocation10 + $0x10] ss:$8 sps:$4 sm:$0xff] (!%p1226_p9)   ;;  %v3697_v59 = vld [vmem:[#allocation10 + $0x24] ss:$8 sps:$4 sm:$0xff] (!%p1226_p9)  }
 0x453   : > { %2745 = vmatpush1.bf16.msra.mxu0 (!%p1226_p9), %v3690_v2  ;;  %2633 = vmatprep.subr.bf16.mxu1 (!%p1226_p9), %v3691_v8  ;;  %v3696_v20 = vld [vmem:[#allocation10 + $0x110] ss:$8 sps:$4 sm:$0xff] (!%p1226_p9)   ;;  %v3699_v24 = vld [vmem:[#allocation10 + $0x124] ss:$8 sps:$4 sm:$0xff] (!%p1226_p9)   ;;  %v3701_v51 = vld [vmem:[#allocation10 + $0x20] ss:$8 sps:$4 sm:$0xff] (!%p1226_p9)  }
 0x454   : > { %2746 = vmatprep.subr.bf16.mxu0 (!%p1226_p9), %v3693_v14  ;;  %v3702_v30 = vld [vmem:[#allocation10 + $0x120] ss:$8 sps:$4 sm:$0xff] (!%p1226_p9)   ;;  %v3703_v35 = vld [vmem:[#allocation10 + $0x34] ss:$8 sps:$4 sm:$0xff] (!%p1226_p9)   ;;  %v3707_v53 = vld [vmem:[#allocation10 + $0x30] ss:$8 sps:$4 sm:$0xff] (!%p1226_p9)  }
 0x455   : > { %v3705_v25 = vld [vmem:[#allocation10 + $0x134] ss:$8 sps:$4 sm:$0xff] (!%p1226_p9)   ;;  %v3708_v38 = vld [vmem:[#allocation10 + $0x130] ss:$8 sps:$4 sm:$0xff] (!%p1226_p9)   ;;  %v3709_v26 = vld [vmem:[#allocation10 + $0x44] ss:$8 sps:$4 sm:$0xff] (!%p1226_p9)  }
 0x456   : > { %2634 = vmatpush1.bf16.msra.mxu1 (!%p1226_p9), %v3695_v17  ;;  %v3711_v32 = vld [vmem:[#allocation10 + $0x144] ss:$8 sps:$4 sm:$0xff] (!%p1226_p9)   ;;  %v3713_v22 = vld [vmem:[#allocation10 + $0x40] ss:$8 sps:$4 sm:$0xff] (!%p1226_p9)   ;;  %v3715_v50 = vld [vmem:[#allocation10 + $0x54] ss:$8 sps:$4 sm:$0xff] (!%p1226_p9)  }
 0x457   : > { %2747 = vmatpush1.bf16.msra.mxu0 %v3696_v20  ;;  %2635 = vmatprep.subr.bf16.mxu1 %v3697_v59  ;;  %v3714_v5 = vld [vmem:[#allocation10 + $0x140] ss:$8 sps:$4 sm:$0xff]   ;;  %v3717_v1 = vld [vmem:[#allocation10 + $0x154] ss:$8 sps:$4 sm:$0xff]   ;;  %v3719_v0 = vld [vmem:[#allocation10 + $0x50] ss:$8 sps:$4 sm:$0xff]  }
 0x458   : > { %2748 = vmatprep.subr.bf16.mxu0 %v3699_v24  ;;  %v3720_v12 = vld [vmem:[#allocation10 + $0x150] ss:$8 sps:$4 sm:$0xff]   ;;  %v3721_v62 = vld [vmem:[#allocation10 + $0x64] ss:$8 sps:$4 sm:$0xff]   ;;  %v3725_v18 = vld [vmem:[#allocation10 + $0x60] ss:$8 sps:$4 sm:$0xff]  }
 0x459   : > { %v3723_v16 = vld [vmem:[#allocation10 + $0x164] ss:$8 sps:$4 sm:$0xff]   ;;  %v3726_v10 = vld [vmem:[#allocation10 + $0x160] ss:$8 sps:$4 sm:$0xff]   ;;  %v3727_v47 = vld [vmem:[#allocation10 + $0x74] ss:$8 sps:$4 sm:$0xff]  }
 0x45a   : > { %2636 = vmatpush1.bf16.msra.mxu1 %v3701_v51  ;;  %v3729_v36 = vld [vmem:[#allocation10 + $0x174] ss:$8 sps:$4 sm:$0xff]   ;;  %v3731_v42 = vld [vmem:[#allocation10 + $0x70] ss:$8 sps:$4 sm:$0xff]   ;;  %v3733_v23 = vld [vmem:[#allocation10 + $0x84] ss:$8 sps:$4 sm:$0xff]  }
 0x45b   : > { %2749 = vmatpush1.bf16.msra.mxu0 %v3702_v30  ;;  %2637 = vmatprep.subr.bf16.mxu1 %v3703_v35  ;;  %v3732_v37 = vld [vmem:[#allocation10 + $0x170] ss:$8 sps:$4 sm:$0xff]   ;;  %v3735_v33 = vld [vmem:[#allocation10 + $0x184] ss:$8 sps:$4 sm:$0xff]   ;;  %v3737_v13 = vld [vmem:[#allocation10 + $0x80] ss:$8 sps:$4 sm:$0xff]  }
 0x45c   : > { %2750 = vmatprep.subr.bf16.mxu0 %v3705_v25  ;;  %v3738_v40 = vld [vmem:[#allocation10 + $0x180] ss:$8 sps:$4 sm:$0xff]   ;;  %v3739_v7 = vld [vmem:[#allocation10 + $0x94] ss:$8 sps:$4 sm:$0xff]   ;;  %v3743_v19 = vld [vmem:[#allocation10 + $0x90] ss:$8 sps:$4 sm:$0xff]  }
 0x45d   : > { %v3741_v48 = vld [vmem:[#allocation10 + $0x194] ss:$8 sps:$4 sm:$0xff]   ;;  %v3744_v61 = vld [vmem:[#allocation10 + $0x190] ss:$8 sps:$4 sm:$0xff]   ;;  %v3745_v31 = vld [vmem:[#allocation10 + $0xa4] ss:$8 sps:$4 sm:$0xff]  }
 0x45e   : > { %2638 = vmatpush1.bf16.msra.mxu1 %v3707_v53  ;;  %v3747_v52 = vld [vmem:[#allocation10 + $0x1a4] ss:$8 sps:$4 sm:$0xff]   ;;  %v3749_v34 = vld [vmem:[#allocation10 + $0xa0] ss:$8 sps:$4 sm:$0xff]   ;;  %v3751_v58 = vld [vmem:[#allocation10 + $0xb4] ss:$8 sps:$4 sm:$0xff]  }
 0x45f   : > { %2751 = vmatpush1.bf16.msra.mxu0 %v3708_v38  ;;  %2639 = vmatprep.subr.bf16.mxu1 %v3709_v26  ;;  %v3750_v55 = vld [vmem:[#allocation10 + $0x1a0] ss:$8 sps:$4 sm:$0xff]   ;;  %v3753_v6 = vld [vmem:[#allocation10 + $0x1b4] ss:$8 sps:$4 sm:$0xff]   ;;  %v3755_v54 = vld [vmem:[#allocation10 + $0xb0] ss:$8 sps:$4 sm:$0xff]  }
 0x460   : > { %2752 = vmatprep.subr.bf16.mxu0 %v3711_v32  ;;  %v2216_v21 = vld [vmem:[#allocation3 + $0x8] sm:$0xff]  ;;  %v2218_v44 = vld [vmem:[#allocation3 + $0x18] sm:$0xff]  ;;  %v2215_v60 = vld [vmem:[#allocation3] sm:$0xff] }
 0x461   : > { %2663 = vmatprep.mubr.bf16.mxu1 %v2216_v21  ;;  %v3756_v63 = vld [vmem:[#allocation10 + $0x1b0] ss:$8 sps:$4 sm:$0xff]   ;;  %v3757_v11 = vld [vmem:[#allocation10 + $0xc4] ss:$8 sps:$4 sm:$0xff]   ;;  %2776 = vmatprep.mubr.bf16.mxu0 %v2218_v44  ;;  %v3761_v27 = vld [vmem:[#allocation10 + $0xc0] ss:$8 sps:$4 sm:$0xff]  }
 0x462   : > { %2640 = vmatpush1.bf16.msra.mxu1 %v3713_v22  ;;  %v3759_v29 = vld [vmem:[#allocation10 + $0x1c4] ss:$8 sps:$4 sm:$0xff]   ;;  %v3762_v49 = vld [vmem:[#allocation10 + $0x1c0] ss:$8 sps:$4 sm:$0xff]   ;;  %v3763_v43 = vld [vmem:[#allocation10 + $0xd4] ss:$8 sps:$4 sm:$0xff]  }
 0x463   : > { %2753 = vmatpush1.bf16.msra.mxu0 %v3714_v5  ;;  %2641 = vmatprep.subr.bf16.mxu1 %v3715_v50  ;;  %v3765_v4 = vld [vmem:[#allocation10 + $0x1d4] ss:$8 sps:$4 sm:$0xff]   ;;  %v3767_v9 = vld [vmem:[#allocation10 + $0xd0] ss:$8 sps:$4 sm:$0xff]   ;;  %v3769_v39 = vld [vmem:[#allocation10 + $0xe4] ss:$8 sps:$4 sm:$0xff]  }
 0x464   : > { %2754 = vmatprep.subr.bf16.mxu0 %v3717_v1  ;;  %v3768_v3 = vld [vmem:[#allocation10 + $0x1d0] ss:$8 sps:$4 sm:$0xff]   ;;  %v3771_v41 = vld [vmem:[#allocation10 + $0x1e4] ss:$8 sps:$4 sm:$0xff]   ;;  %v3773_v15 = vld [vmem:[#allocation10 + $0xe0] ss:$8 sps:$4 sm:$0xff]  }
 0x465   : > { %v3774_v56 = vld [vmem:[#allocation10 + $0x1e0] ss:$8 sps:$4 sm:$0xff]   ;;  %v3775_v28 = vld [vmem:[#allocation10 + $0xf4] ss:$8 sps:$4 sm:$0xff]   ;;  %v3779_v46 = vld [vmem:[#allocation10 + $0xf0] ss:$8 sps:$4 sm:$0xff]  }
 0x466   : > { %2642 = vmatpush1.bf16.msra.mxu1 %v3719_v0  ;;  %v3777_v45 = vld [vmem:[#allocation10 + $0x1f4] ss:$8 sps:$4 sm:$0xff]   ;;  %v3780_v57 = vld [vmem:[#allocation10 + $0x1f0] ss:$8 sps:$4 sm:$0xff]   ;;  %v2220_v8 = vld [vmem:[#allocation3 + $0x28] sm:$0xff] }
 0x467   : > { %2755 = vmatpush1.bf16.msra.mxu0 %v3720_v12  ;;  %2643 = vmatprep.subr.bf16.mxu1 %v3721_v62  ;;  %v2217_v2 = vld [vmem:[#allocation3 + $0x10] sm:$0xff]  ;;  %v2222_v14 = vld [vmem:[#allocation3 + $0x38] sm:$0xff]  ;;  %v2219_v17 = vld [vmem:[#allocation3 + $0x20] sm:$0xff] }
 0x468   : > { %2756 = vmatprep.subr.bf16.mxu0 %v3723_v16  ;;  %v2221_v20 = vld [vmem:[#allocation3 + $0x30] sm:$0xff]  ;;  %v2224_v59 = vld [vmem:[#allocation3 + $0x48] sm:$0xff]  ;;  %v2226_v24 = vld [vmem:[#allocation3 + $0x58] sm:$0xff] }
 0x469   : > { %v2223_v51 = vld [vmem:[#allocation3 + $0x40] sm:$0xff]  ;;  %v2225_v30 = vld [vmem:[#allocation3 + $0x50] sm:$0xff]  ;;  %v2228_v35 = vld [vmem:[#allocation3 + $0x68] sm:$0xff] }
 0x46a   : > { %2644 = vmatpush1.bf16.msra.mxu1 %v3725_v18  ;;  %v2230_v25 = vld [vmem:[#allocation3 + $0x78] sm:$0xff]  ;;  %v2227_v53 = vld [vmem:[#allocation3 + $0x60] sm:$0xff]  ;;  %v2229_v38 = vld [vmem:[#allocation3 + $0x70] sm:$0xff] }
 0x46b   : > { %2757 = vmatpush1.bf16.msra.mxu0 %v3726_v10  ;;  %2645 = vmatprep.subr.bf16.mxu1 %v3727_v47  ;;  %v2232_v26 = vld [vmem:[#allocation3 + $0x88] sm:$0xff]  ;;  %v2234_v32 = vld [vmem:[#allocation3 + $0x98] sm:$0xff]  ;;  %v2231_v22 = vld [vmem:[#allocation3 + $0x80] sm:$0xff] }
 0x46c   : > { %2758 = vmatprep.subr.bf16.mxu0 %v3729_v36  ;;  %v2233_v5 = vld [vmem:[#allocation3 + $0x90] sm:$0xff]  ;;  %v2236_v50 = vld [vmem:[#allocation3 + $0xa8] sm:$0xff]  ;;  %v2238_v1 = vld [vmem:[#allocation3 + $0xb8] sm:$0xff] }
 0x46d   : > { %v2235_v0 = vld [vmem:[#allocation3 + $0xa0] sm:$0xff]  ;;  %v2237_v12 = vld [vmem:[#allocation3 + $0xb0] sm:$0xff]  ;;  %v2240_v62 = vld [vmem:[#allocation3 + $0xc8] sm:$0xff] }
 0x46e   : > { %2646 = vmatpush1.bf16.msra.mxu1 %v3731_v42  ;;  %v2242_v16 = vld [vmem:[#allocation3 + $0xd8] sm:$0xff]  ;;  %v2239_v18 = vld [vmem:[#allocation3 + $0xc0] sm:$0xff]  ;;  %v2241_v10 = vld [vmem:[#allocation3 + $0xd0] sm:$0xff] }
 0x46f   : > { %2759 = vmatpush1.bf16.msra.mxu0 %v3732_v37  ;;  %2647 = vmatprep.subr.bf16.mxu1 %v3733_v23  ;;  %v2244_v47 = vld [vmem:[#allocation3 + $0xe8] sm:$0xff]  ;;  %v2246_v36 = vld [vmem:[#allocation3 + $0xf8] sm:$0xff]  ;;  %v2243_v42 = vld [vmem:[#allocation3 + $0xe0] sm:$0xff] }
 0x470   : > { %2760 = vmatprep.subr.bf16.mxu0 %v3735_v33  ;;  %v2245_v37 = vld [vmem:[#allocation3 + $0xf0] sm:$0xff] }
 0x472   : > { %2648 = vmatpush1.bf16.msra.mxu1 %v3737_v13 }
 0x473   : > { %2761 = vmatpush1.bf16.msra.mxu0 %v3738_v40  ;;  %2649 = vmatprep.subr.bf16.mxu1 %v3739_v7 }
 0x474   : > { %2762 = vmatprep.subr.bf16.mxu0 %v3741_v48 }
 0x476   : > { %2650 = vmatpush1.bf16.msra.mxu1 %v3743_v19 }
 0x477   : > { %2763 = vmatpush1.bf16.msra.mxu0 %v3744_v61  ;;  %2651 = vmatprep.subr.bf16.mxu1 %v3745_v31 }
 0x478   : > { %2764 = vmatprep.subr.bf16.mxu0 %v3747_v52 }
 0x47a   : > { %2652 = vmatpush1.bf16.msra.mxu1 %v3749_v34 }
 0x47b   : > { %2765 = vmatpush1.bf16.msra.mxu0 %v3750_v55  ;;  %2653 = vmatprep.subr.bf16.mxu1 %v3751_v58 }
 0x47c   : > { %2766 = vmatprep.subr.bf16.mxu0 %v3753_v6 }
 0x47e   : > { %2654 = vmatpush1.bf16.msra.mxu1 %v3755_v54 }
 0x47f   : > { %2767 = vmatpush1.bf16.msra.mxu0 %v3756_v63  ;;  %2655 = vmatprep.subr.bf16.mxu1 %v3757_v11 }
 0x480   : > { %2768 = vmatprep.subr.bf16.mxu0 %v3759_v29 }
 0x482   : > { %2656 = vmatpush1.bf16.msra.mxu1 %v3761_v27 }
 0x483   : > { %2769 = vmatpush1.bf16.msra.mxu0 %v3762_v49  ;;  %2657 = vmatprep.subr.bf16.mxu1 %v3763_v43 }
 0x484   : > { %2770 = vmatprep.subr.bf16.mxu0 %v3765_v4 }
 0x486   : > { %2658 = vmatpush1.bf16.msra.mxu1 %v3767_v9 }
 0x487   : > { %2771 = vmatpush1.bf16.msra.mxu0 %v3768_v3  ;;  %2659 = vmatprep.subr.bf16.mxu1 %v3769_v39 }
 0x488   : > { %2772 = vmatprep.subr.bf16.mxu0 %v3771_v41 }
 0x48a   : > { %2660 = vmatpush1.bf16.msra.mxu1 %v3773_v15 }
 0x48b   : > { %2773 = vmatpush1.bf16.msra.mxu0 %v3774_v56  ;;  %2661 = vmatprep.subr.bf16.mxu1 %v3775_v28 }
 0x48c   : > { %2774 = vmatprep.subr.bf16.mxu0 %v3777_v45 }
 0x48e   : > { %2662 = vmatpush1.bf16.msra.mxu1 %v3779_v46 }
 0x48f   : > { %2775 = vmatpush1.bf16.msra.mxu0 %v3780_v57 }
 0x491   : > { %2664 = vmatmul.mubr.bf16.vlgmr.msra.gmra.mrb[0].mxu1 %v2215_v60 }
 0x492   : > { %2777 = vmatmul.mubr.bf16.vlgmr.msra.gmra.mrb[0].mxu0 %v2217_v2  ;;  %2673 = vmatprep.mubr.bf16.mxu1 %v2220_v8 }
 0x493   : > { %2786 = vmatprep.mubr.bf16.mxu0 %v2222_v14 }
 0x499   : > { %2674 = vmatmul.mubr.bf16.gmra.mrb[4].mxu1 %v2219_v17 }
 0x49a   : > { %2787 = vmatmul.mubr.bf16.gmra.mrb[4].mxu0 %v2221_v20  ;;  %2683 = vmatprep.mubr.bf16.mxu1 %v2224_v59 }
 0x49b   : > { %2796 = vmatprep.mubr.bf16.mxu0 %v2226_v24 }
 0x4a1   : > { %2684 = vmatmul.mubr.bf16.gmra.mrb[8].mxu1 %v2223_v51 }
 0x4a2   : > { %2797 = vmatmul.mubr.bf16.gmra.mrb[8].mxu0 %v2225_v30  ;;  %2693 = vmatprep.mubr.bf16.mxu1 %v2228_v35 }
 0x4a3   : > { %2806 = vmatprep.mubr.bf16.mxu0 %v2230_v25 }
 0x4a9   : > { %2694 = vmatmul.mubr.bf16.gmra.mrb[12].mxu1 %v2227_v53 }
 0x4aa   : > { %2807 = vmatmul.mubr.bf16.gmra.mrb[12].mxu0 %v2229_v38  ;;  %2703 = vmatprep.mubr.bf16.mxu1 %v2232_v26 }
 0x4ab   : > { %2816 = vmatprep.mubr.bf16.mxu0 %v2234_v32 }
 0x4b1   : > { %2704 = vmatmul.mubr.bf16.gmra.mrb[16].mxu1 %v2231_v22 }
 0x4b2   : > { %2817 = vmatmul.mubr.bf16.gmra.mrb[16].mxu0 %v2233_v5  ;;  %2713 = vmatprep.mubr.bf16.mxu1 %v2236_v50 }
 0x4b3   : > { %2826 = vmatprep.mubr.bf16.mxu0 %v2238_v1 }
 0x4b9   : > { %2714 = vmatmul.mubr.bf16.gmra.mrb[20].mxu1 %v2235_v0 }
 0x4ba   : > { %2827 = vmatmul.mubr.bf16.gmra.mrb[20].mxu0 %v2237_v12  ;;  %2723 = vmatprep.mubr.bf16.mxu1 %v2240_v62 }
 0x4bb   : > { %2836 = vmatprep.mubr.bf16.mxu0 %v2242_v16 }
 0x4c1   : > { %2724 = vmatmul.mubr.bf16.gmra.mrb[24].mxu1 %v2239_v18 }
 0x4c2   : > { %2837 = vmatmul.mubr.bf16.gmra.mrb[24].mxu0 %v2241_v10  ;;  %2733 = vmatprep.mubr.bf16.mxu1 %v2244_v47 }
 0x4c3   : > { %2846 = vmatprep.mubr.bf16.mxu0 %v2246_v36 }
 0x4c9   : > { %2734 = vmatmul.mubr.bf16.gmra.mrb[28].mxu1 %v2243_v42 }
 0x4ca   : > { %2847 = vmatmul.mubr.bf16.gmra.mrb[28].mxu0 %v2245_v37 }
 0x564   : > { %v2665_v23 = vpop.f32.mrb[0].mxu1 }
 0x565   : > { %v2778_v33 = vpop.f32.mrb[0].mxu0  ;;  %v2667_v40 = vpop.f32.mrb[1].mxu1 }
 0x566   : > { %v2779_v13 = vadd.f32 %v2778_v33, %v2665_v23  ;;  %v2780_v7 = vpop.f32.mrb[1].mxu0  ;;  %v2669_v19 = vpop.f32.mrb[2].mxu1 }
 0x567   : > { %v2781_v48 = vadd.f32 %v2780_v7, %v2667_v40  ;;  %v2782_v61 = vpop.f32.mrb[2].mxu0  ;;  %v2671_v52 = vpop.f32.mrb[3].mxu1 }
 0x568   : > { %2857 = vst [vmem:[#allocation12] sm:$0xff] %v2779_v13  ;;  %v2783_v31 = vadd.f32 %v2782_v61, %v2669_v19  ;;  %v2784_v34 = vpop.f32.mrb[3].mxu0 }
 0x569   : > { %2858 = vst [vmem:[#allocation12 + $0x8] sm:$0xff] %v2781_v48  ;;  %v2785_v55 = vadd.f32 %v2784_v34, %v2671_v52 }
 0x56a   : > { %2859 = vst [vmem:[#allocation12 + $0x10] sm:$0xff] %v2783_v31 }
 0x56b   : > { %2860 = vst [vmem:[#allocation12 + $0x18] sm:$0xff] %v2785_v55 }
 0x56c   : > { %v2675_v58 = vpop.f32.mrb[4].mxu1 }
 0x56d   : > { %v2788_v6 = vpop.f32.mrb[4].mxu0  ;;  %v2677_v44 = vpop.f32.mrb[5].mxu1 }
 0x56e   : > { %v2789_v21 = vadd.f32 %v2788_v6, %v2675_v58  ;;  %v2790_v54 = vpop.f32.mrb[5].mxu0  ;;  %v2679_v11 = vpop.f32.mrb[6].mxu1 }
 0x56f   : > { %v2791_v63 = vadd.f32 %v2790_v54, %v2677_v44  ;;  %v2792_v29 = vpop.f32.mrb[6].mxu0  ;;  %v2681_v49 = vpop.f32.mrb[7].mxu1 }
 0x570   : > { %2861 = vst [vmem:[#allocation12 + $0x20] sm:$0xff] %v2789_v21  ;;  %v2793_v27 = vadd.f32 %v2792_v29, %v2679_v11  ;;  %v2794_v43 = vpop.f32.mrb[7].mxu0 }
 0x571   : > { %2862 = vst [vmem:[#allocation12 + $0x28] sm:$0xff] %v2791_v63  ;;  %v2795_v4 = vadd.f32 %v2794_v43, %v2681_v49 }
 0x572   : > { %2863 = vst [vmem:[#allocation12 + $0x30] sm:$0xff] %v2793_v27 }
 0x573   : > { %2864 = vst [vmem:[#allocation12 + $0x38] sm:$0xff] %v2795_v4 }
 0x574   : > { %v2685_v9 = vpop.f32.mrb[8].mxu1 }
 0x575   : > { %v2798_v3 = vpop.f32.mrb[8].mxu0  ;;  %v2687_v41 = vpop.f32.mrb[9].mxu1 }
 0x576   : > { %v2799_v39 = vadd.f32 %v2798_v3, %v2685_v9  ;;  %v2800_v15 = vpop.f32.mrb[9].mxu0  ;;  %v2689_v28 = vpop.f32.mrb[10].mxu1 }
 0x577   : > { %v2801_v56 = vadd.f32 %v2800_v15, %v2687_v41  ;;  %v2802_v45 = vpop.f32.mrb[10].mxu0  ;;  %v2691_v57 = vpop.f32.mrb[11].mxu1 }
 0x578   : > { %2865 = vst [vmem:[#allocation12 + $0x40] sm:$0xff] %v2799_v39  ;;  %v2803_v46 = vadd.f32 %v2802_v45, %v2689_v28  ;;  %v2804_v60 = vpop.f32.mrb[11].mxu0 }
 0x579   : > { %2866 = vst [vmem:[#allocation12 + $0x48] sm:$0xff] %v2801_v56  ;;  %v2805_v2 = vadd.f32 %v2804_v60, %v2691_v57 }
 0x57a   : > { %2867 = vst [vmem:[#allocation12 + $0x50] sm:$0xff] %v2803_v46 }
 0x57b   : > { %2868 = vst [vmem:[#allocation12 + $0x58] sm:$0xff] %v2805_v2 }
 0x57c   : > { %v2695_v8 = vpop.f32.mrb[12].mxu1 }
 0x57d   : > { %v2808_v14 = vpop.f32.mrb[12].mxu0  ;;  %v2697_v20 = vpop.f32.mrb[13].mxu1 }
 0x57e   : > { %v2809_v17 = vadd.f32 %v2808_v14, %v2695_v8  ;;  %v2810_v59 = vpop.f32.mrb[13].mxu0  ;;  %v2699_v51 = vpop.f32.mrb[14].mxu1 }
 0x57f   : > { %v2811_v24 = vadd.f32 %v2810_v59, %v2697_v20  ;;  %v2812_v30 = vpop.f32.mrb[14].mxu0  ;;  %v2701_v25 = vpop.f32.mrb[15].mxu1 }
 0x580   : > { %2869 = vst [vmem:[#allocation12 + $0x60] sm:$0xff] %v2809_v17  ;;  %v2813_v35 = vadd.f32 %v2812_v30, %v2699_v51  ;;  %v2814_v53 = vpop.f32.mrb[15].mxu0 }
 0x581   : > { %2870 = vst [vmem:[#allocation12 + $0x68] sm:$0xff] %v2811_v24  ;;  %v2815_v38 = vadd.f32 %v2814_v53, %v2701_v25 }
 0x582   : > { %2871 = vst [vmem:[#allocation12 + $0x70] sm:$0xff] %v2813_v35 }
 0x583   : > { %2872 = vst [vmem:[#allocation12 + $0x78] sm:$0xff] %v2815_v38 }
 0x584   : > { %v2705_v26 = vpop.f32.mrb[16].mxu1 }
 0x585   : > { %v2818_v32 = vpop.f32.mrb[16].mxu0  ;;  %v2707_v5 = vpop.f32.mrb[17].mxu1 }
 0x586   : > { %v2819_v22 = vadd.f32 %v2818_v32, %v2705_v26  ;;  %v2820_v50 = vpop.f32.mrb[17].mxu0  ;;  %v2709_v0 = vpop.f32.mrb[18].mxu1 }
 0x587   : > { %v2821_v1 = vadd.f32 %v2820_v50, %v2707_v5  ;;  %v2822_v12 = vpop.f32.mrb[18].mxu0  ;;  %v2711_v16 = vpop.f32.mrb[19].mxu1 }
 0x588   : > { %2873 = vst [vmem:[#allocation12 + $0x80] sm:$0xff] %v2819_v22  ;;  %v2823_v62 = vadd.f32 %v2822_v12, %v2709_v0  ;;  %v2824_v18 = vpop.f32.mrb[19].mxu0 }
 0x589   : > { %2874 = vst [vmem:[#allocation12 + $0x88] sm:$0xff] %v2821_v1  ;;  %v2825_v10 = vadd.f32 %v2824_v18, %v2711_v16 }
 0x58a   : > { %2875 = vst [vmem:[#allocation12 + $0x90] sm:$0xff] %v2823_v62 }
 0x58b   : > { %2876 = vst [vmem:[#allocation12 + $0x98] sm:$0xff] %v2825_v10 }
 0x58c   : > { %v2715_v47 = vpop.f32.mrb[20].mxu1 }
 0x58d   : > { %v2828_v36 = vpop.f32.mrb[20].mxu0  ;;  %v2717_v37 = vpop.f32.mrb[21].mxu1 }
 0x58e   : > { %v2829_v42 = vadd.f32 %v2828_v36, %v2715_v47  ;;  %v2830_v23 = vpop.f32.mrb[21].mxu0  ;;  %v2719_v13 = vpop.f32.mrb[22].mxu1 }
 0x58f   : > { %v2831_v33 = vadd.f32 %v2830_v23, %v2717_v37  ;;  %v2832_v40 = vpop.f32.mrb[22].mxu0  ;;  %v2721_v48 = vpop.f32.mrb[23].mxu1 }
 0x590   : > { %2877 = vst [vmem:[#allocation12 + $0xa0] sm:$0xff] %v2829_v42  ;;  %v2833_v7 = vadd.f32 %v2832_v40, %v2719_v13  ;;  %v2834_v19 = vpop.f32.mrb[23].mxu0 }
 0x591   : > { %2878 = vst [vmem:[#allocation12 + $0xa8] sm:$0xff] %v2831_v33  ;;  %v2835_v61 = vadd.f32 %v2834_v19, %v2721_v48 }
 0x592   : > { %2879 = vst [vmem:[#allocation12 + $0xb0] sm:$0xff] %v2833_v7 }
 0x593   : > { %2880 = vst [vmem:[#allocation12 + $0xb8] sm:$0xff] %v2835_v61 }
 0x594   : > { %v2725_v31 = vpop.f32.mrb[24].mxu1 }
 0x595   : > { %v2838_v52 = vpop.f32.mrb[24].mxu0  ;;  %v2727_v55 = vpop.f32.mrb[25].mxu1 }
 0x596   : > { %v2839_v34 = vadd.f32 %v2838_v52, %v2725_v31  ;;  %v2840_v58 = vpop.f32.mrb[25].mxu0  ;;  %v2729_v21 = vpop.f32.mrb[26].mxu1 }
 0x597   : > { %v2841_v6 = vadd.f32 %v2840_v58, %v2727_v55  ;;  %v2842_v44 = vpop.f32.mrb[26].mxu0  ;;  %v2731_v63 = vpop.f32.mrb[27].mxu1 }
 0x598   : > { %2881 = vst [vmem:[#allocation12 + $0xc0] sm:$0xff] %v2839_v34  ;;  %v2843_v54 = vadd.f32 %v2842_v44, %v2729_v21  ;;  %v2844_v11 = vpop.f32.mrb[27].mxu0 }
 0x599   : > { %2882 = vst [vmem:[#allocation12 + $0xc8] sm:$0xff] %v2841_v6  ;;  %v2845_v29 = vadd.f32 %v2844_v11, %v2731_v63 }
 0x59a   : > { %2883 = vst [vmem:[#allocation12 + $0xd0] sm:$0xff] %v2843_v54 }
 0x59b   : > { %2884 = vst [vmem:[#allocation12 + $0xd8] sm:$0xff] %v2845_v29 }
 0x59c   : > { %v2735_v27 = vpop.f32.mrb[28].mxu1 }
 0x59d   : > { %v2848_v49 = vpop.f32.mrb[28].mxu0  ;;  %v2737_v4 = vpop.f32.mrb[29].mxu1 }
 0x59e   : > { %v2849_v43 = vadd.f32 %v2848_v49, %v2735_v27  ;;  %v2850_v9 = vpop.f32.mrb[29].mxu0  ;;  %v2739_v39 = vpop.f32.mrb[30].mxu1 }
 0x59f   : > { %v2851_v3 = vadd.f32 %v2850_v9, %v2737_v4  ;;  %v2852_v41 = vpop.f32.mrb[30].mxu0  ;;  %v2741_v56 = vpop.f32.mrb[31].mxu1 }
 0x5a0   : > { %2885 = vst [vmem:[#allocation12 + $0xe0] sm:$0xff] %v2849_v43  ;;  %v2853_v15 = vadd.f32 %v2852_v41, %v2739_v39  ;;  %v2854_v28 = vpop.f32.mrb[31].mxu0 }
 0x5a1   : > { %2886 = vst [vmem:[#allocation12 + $0xe8] sm:$0xff] %v2851_v3  ;;  %v2855_v45 = vadd.f32 %v2854_v28, %v2741_v56 }
 0x5a2   : > { %2887 = vst [vmem:[#allocation12 + $0xf0] sm:$0xff] %v2853_v15 }
 0x5a3   : > { %2888 = vst [vmem:[#allocation12 + $0xf8] sm:$0xff] %v2855_v45 }
 0x5a4 PF: > { %s4008_s23 = smov [#allocation12]   ;;  %p5199_p6 = scmp.eq.s32.totalorder %s4159_s24, 4 }
 0x5a5   : > { %s2908_s20 = sshll.u32 %s4008_s23, 4  ;;  %s2909_s20 = int_to_ptr.vmem [resolvable:$true] %s2908_s20 }
 0x5a6   : > { %s3897_s22 = scalar_lea.vmem %s2909_s20, 4096  ;;  %s3903_s0 = scalar_lea.vmem %s2909_s20, 8192 }
 0x5a7   : > { %p3898_p0 = scmp.ne.s32.totalorder %s2909_s20, %s3897_s22  ;;  %p3904_p3 = scmp.lt.s32.totalorder %s2909_s20, %s2909_s20 }
 0x5a8   : > { %p3905_p1 = scmp.lt.s32.totalorder %s3903_s0, %s3897_s22 }
 0x5a9   : > { %p3899_p12 = pnand %p3898_p0, %p5199_p6 }
 0x5aa   : > { %p3906_p7 = por %p3905_p1, %p3904_p3 }
 0x5ab   : > { %p3900_p8 = pneg %p3899_p12 }
 0x5ad   : > { %p3907_p2 = pnand %p3906_p7, %p3900_p8 }
 0x5af   : > { %3910 = shalt.err (!%p3907_p2)
}
 0x5b0   : > { %s5200_s27 = sld [smem:[#allocation25_spill]]  ;;  %p5202_p4 = pmov %p5199_p6 }
 0x5b6   : > { %s5201_s18 = smov %s5200_s27  ;;  %s3911_s16 = scalar_lea.hbm %s5200_s27, 4096 }
 0x5b7   : > { %p3912_p10 = scmp.ne.s32.totalorder %s5201_s18, %s3911_s16  ;;  %p3917_p9 = scmp.lt.u32.totalorder %s3911_s16, %s5201_s18 }
 0x5b9   : > { %p3913_p5 = pnand %p3912_p10, %p5202_p4 }
 0x5bb   : > { %p3914_p13 = pneg %p3913_p5 }
 0x5bd   : > { %p3919_p11 = pnand %p3917_p9, %p3914_p13 }
 0x5bf   : > { %3922 = shalt.err (!%p3919_p11)
}
 0x5c0   : > { %s4009_s12 = smov 256   ;;  %s4010_s30 = smov 16  }
 0x5c1   : > { %p5203_p0 = pmov %p5202_p4 }
 0x5c3   : > { %3419 = dma.vmem_to_hbm [thread:$0]  (%p5203_p0), %s2909_s20, 4096, %s5201_s18, [#allocation6], %s4009_s12, %s4009_s12, %s4010_s30  }
 0x5c4 PF: > { %p3442_p6 = scmp.ge.s32.totalorder %s3997_s11, 2  ;;  %p5204_p12 = scmp.eq.s32.totalorder %s4200_s26, 4 }
 0x5c6   : > { %p3436_p8 = pnand %p3442_p6, %p5204_p12 }
 0x5c8   : > { %3968 = dma.done.wait (!%p3436_p8), [#allocation6], 4096  }
 0x5c9   : > { %3970 = vsyncadd (!%p3436_p8), [#allocation6], 4294963200  ;;  %s5205_s11 = sld [smem:[#allocation19_spill]]  ;;  %s5206_s13 = sld [smem:[#allocation18_spill]] }
 0x5ca   : > { %s5207_s10 = sld [smem:[#allocation20_spill]]  ;;  %s5208_s27 = smov %s3977_s28 }
 0x5cb   : > { %s5209_s28 = smov %s3981_s29  ;;  %s5210_s29 = smov %s4252_s5 }
 0x5cc   : > { %s5211_s30 = smov %s3989_s9 }
 0x5cf   : > { %p25_p3 = scmp.ge.s32.totalorder %s5205_s11, 7   ;;  %s5212_s9 = smov %s5206_s13 }
 0x5d1   :  { %27 = sbr.rel (!%p25_p3) target bundleno = 16 (0x10), region = 144 }
 0x5d8   :  { %2929 = vsyncpa [#allocation5], 1 }
 0x5d9   :  { %2931 = vsyncpa [#allocation5 + $0x1], 1 }
 0x5da   :  { %2932 = vsyncpa [#allocation8], 1 }
 0x5db   :  { %2934 = vsyncpa [#allocation8 + $0x1], 1 }
 0x5dc   :  { %2935 = vsyncpa [#allocation11], 1 }
 0x5dd   :  { %2937 = vsyncpa [#allocation11 + $0x1], 1 }
 0x5de   :  { %2938 = vsyncpa [#allocation6], 1 }
 0x5df   :  { %2940 = vsyncpa [#allocation6 + $0x1], 1 }

</bundles_post_ra>
